<compile_context>
chip_gen: v7x
topology: tpu7x:2x2x1
jax: 0.10.0
libtpu: 0.0.40
codegen_flags: <defaults>
</compile_context>

<pallas_src>
import functools
import math

import jax
import jax.numpy as jnp
from jax import lax
from jax.experimental import pallas as pl
from jax.experimental.pallas import tpu as pltpu


# Matmul operand dtype.  float32 keeps exact parity with the f32 PyTorch
# module; set to jnp.bfloat16 on v6e/v7x for higher MXU throughput and half
# the weight DMA bytes (accumulation stays f32 via preferred_element_type).
MXU_DTYPE = jnp.float32


def _mm(a, b):
    return jnp.dot(a.astype(MXU_DTYPE), b.astype(MXU_DTYPE),
                   preferred_element_type=jnp.float32)


def _mm_t(a, b):  # a @ b.T without materializing the transpose
    return lax.dot_general(a.astype(MXU_DTYPE), b.astype(MXU_DTYPE),
                           (((1,), (1,)), ((), ())),
                           preferred_element_type=jnp.float32)


def _ln(h, g, b, eps=1e-6):
    mu = jnp.mean(h, axis=-1, keepdims=True)
    c = h - mu
    var = jnp.mean(c * c, axis=-1, keepdims=True)
    return c * lax.rsqrt(var + eps) * g + b


# ----------------------------------------------------------------------------
# Fused whole-encoder kernel.  Grid = (batch_blocks, n_layer).  For each
# batch block the activation slab lives in VMEM scratch across all layers;
# per-layer weights stream in (pipelined) along the inner "arbitrary" axis.
# ----------------------------------------------------------------------------
def _encoder_stack_kernel(x_ref, wqkv_ref, bqkv_ref, e_ref,
                          wfc_ref, bfc_ref, g1_ref, b1_ref,
                          wp_ref, bp_ref, ws_ref, bs_ref, g2_ref, b2_ref,
                          out_ref, w_ref, x_sc, *, NB, L, H, dh):
    layer = pl.program_id(1)
    D = H * dh

    # First layer of this batch block: load activations into the resident slab.
    @pl.when(layer == 0)
    def _():
        x_sc[...] = x_ref[...]

    x = x_sc[...]                                            # (NB*L, D)

    # QKV projection for the whole folded slab in one MXU pass: (NB*L,D)@(D,3D)
    qkv = _mm(x, wqkv_ref[0]) + bqkv_ref[0]                  # (NB*L, 3D)

    scale = 1.0 / math.sqrt(dh)
    row = lax.broadcasted_iota(jnp.int32, (L, L), 0)         # query index i
    col = lax.broadcasted_iota(jnp.int32, (L, L), 1)         # rel/key index
    tri = col >= (L - 1 - row)                               # _qe_masking keep-mask
    rshift = jnp.where(row + 1 == L, 0, row + 1)             # per-row roll (i+1) mod L
    nbits = max(1, (L - 1).bit_length())
    e = e_ref[0]                                             # (L, dh)

    attn_rows, w_rows = [], []
    for b in range(NB):                                      # static, small
        r0 = b * L
        head_outs, w_pieces = [], []
        for h in range(H):                                   # static, H = D // 64
            lo = h * dh
            q = qkv[r0:r0 + L, lo:lo + dh]                   # (L, dh)
            k = qkv[r0:r0 + L, D + lo:D + lo + dh]
            v = qkv[r0:r0 + L, 2 * D + lo:2 * D + lo + dh]

            # Music-Transformer skew in O(L^2): mask QE with the triangle,
            # then circular-right-shift row i by (i+1) mod L with a log2(L)
            # barrel shifter of static jnp.roll's (static slices + concats).
            # TODO(synk): at realistic L this is one XLU op:
            #   pltpu.roll(qe, shift=1, axis=1, stride=1, stride_axis=0).
            qe = jnp.where(tri, _mm_t(q, e), 0.0)            # (L, L)
            srel = qe
            for bit in range(nbits):
                rolled = jnp.roll(srel, 1 << bit, axis=1)
                take = (jnp.right_shift(rshift, bit) & 1) == 1
                srel = jnp.where(take, rolled, srel)

            logits = (_mm_t(q, k) + srel) * scale
            # TODO(synk): optional additive `mask` argument (mask * -1e9) is
            # not plumbed through; only the mask=None path is exercised.
            mx = jnp.max(logits, axis=-1, keepdims=True)
            ex = jnp.exp(logits - mx)
            w = ex / jnp.sum(ex, axis=-1, keepdims=True)     # exact softmax
            head_outs.append(_mm(w, v))                      # (L, dh)
            # Flatten (L, L) -> (1, L*L) using lane-axis concats of row slices
            # only (no sublane->lane relayout) so the w store is lane-dense.
            w_pieces.extend([w[i:i + 1, :] for i in range(L)])
        attn_rows.append(jnp.concatenate(head_outs, axis=1))    # (L, D)
        w_rows.append(jnp.concatenate(w_pieces, axis=1))        # (1, H*L*L)

    attn = jnp.concatenate(attn_rows, axis=0)                   # (NB*L, D)
    w_ref[0] = jnp.concatenate(w_rows, axis=0)                  # (NB, H*L*L)

    # fc -> residual + LN1 -> FFN(relu) -> residual + LN2 on the folded slab.
    fc = _mm(attn, wfc_ref[0]) + bfc_ref[0]
    out1 = _ln(fc + x, g1_ref[0], b1_ref[0])
    f = jnp.maximum(_mm(out1, wp_ref[0]) + bp_ref[0], 0.0)
    f = _mm(f, ws_ref[0]) + bs_ref[0]
    y = _ln(out1 + f, g2_ref[0], b2_ref[0])

    x_sc[...] = y                                            # carry to next layer

    @pl.when(layer == pl.num_programs(1) - 1)
    def _():
        out_ref[...] = y.astype(out_ref.dtype)


# ----------------------------------------------------------------------------
# One-time parameter packing (hoisted out of the per-forward path).
# ----------------------------------------------------------------------------
def preprocess_params(params, L, max_seq):
    """Fuse Wq|Wk|Wv, slice E to the active length, and stack every layer's
    weights along a leading axis so a single pallas_call can stream them."""
    # TODO(synk): len_k != len_q / L > max_seq skew-padding path not implemented.
    assert L <= max_seq
    layers = params["layers"]
    stack = lambda k: jnp.stack([lp[k] for lp in layers])
    return dict(
        wqkv=jnp.stack([jnp.concatenate([lp["wq"], lp["wk"], lp["wv"]], axis=1)
                        for lp in layers]),
        bqkv=jnp.stack([jnp.concatenate([lp["bq"], lp["bk"], lp["bv"]], axis=1)
                        for lp in layers]),
        e=jnp.stack([lp["E"][max_seq - L:, :] for lp in layers]),
        wfc=stack("wfc"), bfc=stack("bfc"), g1=stack("g1"), b1=stack("b1"),
        wp=stack("wp"), bp=stack("bp"), ws=stack("ws"), bs=stack("bs"),
        g2=stack("g2"), b2=stack("b2"))


def encoder_forward(params, ids, *, H, dh, max_seq, pre=None, batch_block=None):
    B, L = ids.shape
    D = params["emb"].shape[1]
    if pre is None:
        pre = preprocess_params(params, L, max_seq)
    n_layer = pre["wqkv"].shape[0]
    Dff = pre["wp"].shape[2]

    # Fold batch into the matmul M dimension: each program sees a (NB*L, D)
    # slab.  Default NB=B -> a single folded program (best on v5e/v6e single
    # TC); on v7x pass batch_block=B//2 so both TensorCores get a grid point.
    NB = B if batch_block is None else batch_block
    assert B % NB == 0
    n_bb = B // NB

    # glue: data-dependent embedding gather + sqrt(d) scale; dropout = eval.
    x = jnp.take(params["emb"], ids, axis=0) * math.sqrt(D)
    x2 = x.reshape(B * L, D)

    kernel = functools.partial(_encoder_stack_kernel, NB=NB, L=L, H=H, dh=dh)
    layer_spec = lambda shape: pl.BlockSpec((1,) + shape, lambda bb, l: (l, 0, 0))

    out, w_all = pl.pallas_call(
        kernel,
        out_shape=(jax.ShapeDtypeStruct((B * L, D), jnp.float32),
                   jax.ShapeDtypeStruct((n_layer, B, H * L * L), jnp.float32)),
        grid=(n_bb, n_layer),
        in_specs=[
            pl.BlockSpec((NB * L, D), lambda bb, l: (bb, 0)),  # x (read at l==0)
            layer_spec((D, 3 * D)),                            # Wq|Wk|Wv fused
            layer_spec((1, 3 * D)),                            # bq|bk|bv
            layer_spec((L, dh)),                               # E slice
            layer_spec((D, D)),                                # fc weight
            layer_spec((1, D)),                                # fc bias
            layer_spec((1, D)),                                # LN1 gamma
            layer_spec((1, D)),                                # LN1 beta
            layer_spec((D, Dff)),                              # FFN_pre W
            layer_spec((1, Dff)),                              # FFN_pre b
            layer_spec((Dff, D)),                              # FFN_suf W
            layer_spec((1, D)),                                # FFN_suf b
            layer_spec((1, D)),                                # LN2 gamma
            layer_spec((1, D)),                                # LN2 beta
        ],
        out_specs=(
            pl.BlockSpec((NB * L, D), lambda bb, l: (bb, 0)),          # last layer
            pl.BlockSpec((1, NB, H * L * L), lambda bb, l: (l, bb, 0)),  # lane-dense w
        ),
        scratch_shapes=[pltpu.VMEM((NB * L, D), jnp.float32)],
        compiler_params=pltpu.CompilerParams(
            dimension_semantics=("parallel", "arbitrary")),
    )(x2, pre["wqkv"], pre["bqkv"], pre["e"], pre["wfc"], pre["bfc"],
      pre["g1"], pre["b1"], pre["wp"], pre["bp"], pre["ws"], pre["bs"],
      pre["g2"], pre["b2"])

    out = out.reshape(B, L, D)
    weights = [w_all[i].reshape(B, H, L, L) for i in range(n_layer)]
    return out, weights


# ----------------------------------------------------------------------------
# Pure-JAX reference mirroring the PyTorch forward exactly (for validation)
# ----------------------------------------------------------------------------
def _ref_layer(lp, x, H, dh, max_seq):
    B, L, D = x.shape

    def heads(t):
        return t.reshape(B, L, H, dh).transpose(0, 2, 1, 3)

    q = heads(x @ lp["wq"] + lp["bq"])
    k = heads(x @ lp["wk"] + lp["bk"])
    v = heads(x @ lp["wv"] + lp["bv"])
    e = lp["E"][max(0, max_seq - L):, :]
    M = e.shape[0]
    qe = jnp.einsum("bhld,md->bhlm", q, e)
    li = jnp.arange(L)[:, None]
    mi = jnp.arange(M)[None, :]
    qe = qe * (mi >= (M - 1 - li)).astype(qe.dtype)
    padded = jnp.pad(qe, ((0, 0), (0, 0), (0, 0), (1, 0)))
    srel = padded.reshape(B, H, M + 1, L)[:, :, 1:, :]
    qkt = jnp.einsum("bhld,bhmd->bhlm", q, k)
    logits = (qkt + srel) / math.sqrt(dh)
    w = jax.nn.softmax(logits, axis=-1)
    attn = jnp.einsum("bhlm,bhmd->bhld", w, v)
    out = attn.transpose(0, 2, 1, 3).reshape(B, L, D)
    out = out @ lp["wfc"] + lp["bfc"]
    out1 = _ln(out + x, lp["g1"], lp["b1"])
    f = jax.nn.relu(out1 @ lp["wp"] + lp["bp"]) @ lp["ws"] + lp["bs"]
    out2 = _ln(out1 + f, lp["g2"], lp["b2"])
    return out2, w


def ref_encoder(params, ids, *, H, dh, max_seq):
    D = params["emb"].shape[1]
    x = jnp.take(params["emb"], ids, axis=0) * math.sqrt(D)
    ws = []
    for lp in params["layers"]:
        x, w = _ref_layer(lp, x, H, dh, max_seq)
        ws.append(w)
    return x, ws


# ----------------------------------------------------------------------------
# Deterministic parameter init (synthetic; shapes follow the module __init__)
# ----------------------------------------------------------------------------
def init_params(key, vocab, D, n_layer, max_seq, H, dh):
    k_emb, *k_layers = jax.random.split(key, 1 + n_layer)
    params = {"emb": 0.02 * jax.random.normal(k_emb, (vocab, D), jnp.float32),
              "layers": []}
    for kl in k_layers:
        ks = jax.random.split(kl, 12)
        lin = lambda k, i, o, s=0.05: s * jax.random.normal(k, (i, o), jnp.float32)
        vec = lambda k, n, s=0.01: s * jax.random.normal(k, (1, n), jnp.float32)
        lp = dict(
            wq=lin(ks[0], D, D), bq=vec(ks[1], D),
            wk=lin(ks[2], D, D), bk=vec(ks[3], D),
            wv=lin(ks[4], D, D), bv=vec(ks[5], D),
            wfc=lin(ks[6], D, D), bfc=vec(ks[7], D),
            wp=lin(ks[8], D, D // 2), bp=vec(ks[8], D // 2),
            ws=lin(ks[9], D // 2, D), bs=vec(ks[9], D),
            g1=jnp.ones((1, D), jnp.float32), b1=jnp.zeros((1, D), jnp.float32),
            g2=jnp.ones((1, D), jnp.float32), b2=jnp.zeros((1, D), jnp.float32),
            E=jax.random.normal(ks[10], (max_seq, dh), jnp.float32),
        )
        params["layers"].append(lp)
    return params


if __name__ == "__main__":
    # config: n_embd=128, n_layer=2, n_ctx=8, meta_vocab_size=50, dropout=0.1
    B, L = 2, 8
    D, n_layer, vocab, max_seq = 128, 2, 50, 8
    H = D // 64          # h = d_model // 64 as in Encoder.__init__
    dh = D // H          # = 64

    key = jax.random.PRNGKey(0)
    kp, kx = jax.random.split(key)
    params = init_params(kp, vocab, D, n_layer, max_seq, H, dh)
    ids = jax.random.randint(kx, (B, L), 0, vocab, dtype=jnp.int32)

    # One-time weight packing (hoisted out of the forward path).
    pre = preprocess_params(params, L, max_seq)

    out, weights = encoder_forward(params, ids, H=H, dh=dh, max_seq=max_seq,
                                   pre=pre)
    out = jax.block_until_ready(out)

    ref_out, ref_ws = ref_encoder(params, ids, H=H, dh=dh, max_seq=max_seq)
    assert out.shape == (B, L, D)
    # Tolerance covers MXU f32 multi-pass vs XLA reference matmul differences.
    assert jnp.allclose(out, ref_out, atol=3e-3, rtol=3e-3), \
        float(jnp.max(jnp.abs(out - ref_out)))
    for w, rw in zip(weights, ref_ws):
        assert w.shape == (B, H, L, L)
        assert jnp.allclose(w, rw, atol=3e-3, rtol=3e-3), \
            float(jnp.max(jnp.abs(w - rw)))

    print("KERNEL_OK")
</pallas_src>

<mosaic_0001>
module attributes {stable_mosaic.version = 11 : i64} {
  func.func @_encoder_stack_kernel(%arg0: i32, %arg1: i32, %arg2: memref<16x128xf32, #tpu.memory_space<vmem>>, %arg3: memref<1x128x384xf32, #tpu.memory_space<vmem>>, %arg4: memref<1x1x384xf32, #tpu.memory_space<vmem>>, %arg5: memref<1x8x64xf32, #tpu.memory_space<vmem>>, %arg6: memref<1x128x128xf32, #tpu.memory_space<vmem>>, %arg7: memref<1x1x128xf32, #tpu.memory_space<vmem>>, %arg8: memref<1x1x128xf32, #tpu.memory_space<vmem>>, %arg9: memref<1x1x128xf32, #tpu.memory_space<vmem>>, %arg10: memref<1x128x64xf32, #tpu.memory_space<vmem>>, %arg11: memref<1x1x64xf32, #tpu.memory_space<vmem>>, %arg12: memref<1x64x128xf32, #tpu.memory_space<vmem>>, %arg13: memref<1x1x128xf32, #tpu.memory_space<vmem>>, %arg14: memref<1x1x128xf32, #tpu.memory_space<vmem>>, %arg15: memref<1x1x128xf32, #tpu.memory_space<vmem>>, %arg16: memref<16x128xf32, #tpu.memory_space<vmem>>, %arg17: memref<1x2x128xf32, #tpu.memory_space<vmem>>, %arg18: memref<16x128xf32, #tpu.memory_space<vmem>>) attributes {dimension_semantics = [#tpu.dimension_semantics<parallel>, #tpu.dimension_semantics<arbitrary>], iteration_bounds = array<i64: 1, 2>, scalar_prefetch = 0 : i64, scratch_operands = 1 : i64, tpu.core_type = #tpu.core_type<tc>, window_params = [{transform_indices = @transform_0, window_bounds = array<i64: 16, 128>}, {transform_indices = @transform_1, window_bounds = array<i64: 1, 128, 384>}, {transform_indices = @transform_2, window_bounds = array<i64: 1, 1, 384>}, {transform_indices = @transform_3, window_bounds = array<i64: 1, 8, 64>}, {transform_indices = @transform_4, window_bounds = array<i64: 1, 128, 128>}, {transform_indices = @transform_5, window_bounds = array<i64: 1, 1, 128>}, {transform_indices = @transform_6, window_bounds = array<i64: 1, 1, 128>}, {transform_indices = @transform_7, window_bounds = array<i64: 1, 1, 128>}, {transform_indices = @transform_8, window_bounds = array<i64: 1, 128, 64>}, {transform_indices = @transform_9, window_bounds = array<i64: 1, 1, 64>}, {transform_indices = @transform_10, window_bounds = array<i64: 1, 64, 128>}, {transform_indices = @transform_11, window_bounds = array<i64: 1, 1, 128>}, {transform_indices = @transform_12, window_bounds = array<i64: 1, 1, 128>}, {transform_indices = @transform_13, window_bounds = array<i64: 1, 1, 128>}, {transform_indices = @transform_14, window_bounds = array<i64: 16, 128>}, {transform_indices = @transform_15, window_bounds = array<i64: 1, 2, 128>}]} {
    %c0_i32 = arith.constant 0 : i32
    %0 = arith.cmpi eq, %arg1, %c0_i32 : i32
    %1 = arith.extui %0 : i1 to i32
    %c0_i32_0 = arith.constant 0 : i32
    %2 = arith.cmpi ne, %1, %c0_i32_0 : i32
    scf.if %2 {
      %c0_127 = arith.constant 0 : index
      %c0_128 = arith.constant 0 : index
      %344 = vector.load %arg2[%c0_127, %c0_128] : memref<16x128xf32, #tpu.memory_space<vmem>>, vector<16x128xf32>
      %c0_129 = arith.constant 0 : index
      %c0_130 = arith.constant 0 : index
      %345 = vector.load %arg18[%c0_129, %c0_130] : memref<16x128xf32, #tpu.memory_space<vmem>>, vector<16x128xf32>
      tpu.vector_store %arg18[%c0_129, %c0_130], %344 {strides = array<i32>} : memref<16x128xf32, #tpu.memory_space<vmem>>, vector<16x128xf32>,
    } else {
    }
    %c0 = arith.constant 0 : index
    %c0_1 = arith.constant 0 : index
    %3 = vector.load %arg18[%c0, %c0_1] : memref<16x128xf32, #tpu.memory_space<vmem>>, vector<16x128xf32>
    %c0_2 = arith.constant 0 : index
    %c0_3 = arith.constant 0 : index
    %c0_4 = arith.constant 0 : index
    %4 = vector.load %arg3[%c0_2, %c0_3, %c0_4] : memref<1x128x384xf32, #tpu.memory_space<vmem>>, vector<1x128x384xf32>
    %5 = vector.shape_cast %4 : vector<1x128x384xf32> to vector<128x384xf32>
    %cst = arith.constant dense<0.000000e+00> : vector<16x384xf32>
    %6 = tpu.matmul %3, %5, %cst {dimension_numbers = #tpu.dot_dimension_numbers<[1], [0], [0], [1], [0, 0, 1, 1], [], []>} : vector<16x128xf32>, vector<128x384xf32>, vector<16x384xf32> -> vector<16x384xf32>
    %c0_5 = arith.constant 0 : index
    %c0_6 = arith.constant 0 : index
    %c0_7 = arith.constant 0 : index
    %7 = vector.load %arg4[%c0_5, %c0_6, %c0_7] : memref<1x1x384xf32, #tpu.memory_space<vmem>>, vector<1x1x384xf32>
    %8 = vector.shape_cast %7 : vector<1x1x384xf32> to vector<1x384xf32>
    %9 = vector.broadcast %8 : vector<1x384xf32> to vector<16x384xf32>
    %10 = arith.addf %6, %9 : vector<16x384xf32>
    %11 = tpu.iota {dimensions = array<i32: 0>} : vector<8x8xi32>
    %12 = tpu.iota {dimensions = array<i32: 1>} : vector<8x8xi32>
    %c7_i32 = arith.constant 7 : i32
    %13 = vector.broadcast %c7_i32 : i32 to vector<8x8xi32>
    %14 = arith.subi %13, %11 : vector<8x8xi32>
    %15 = arith.cmpi sge, %12, %14 : vector<8x8xi32>
    %c1_i32 = arith.constant 1 : i32
    %16 = vector.broadcast %c1_i32 : i32 to vector<8x8xi32>
    %17 = arith.addi %11, %16 : vector<8x8xi32>
    %c8_i32 = arith.constant 8 : i32
    %18 = vector.broadcast %c8_i32 : i32 to vector<8x8xi32>
    %19 = arith.cmpi eq, %17, %18 : vector<8x8xi32>
    %c1_i32_8 = arith.constant 1 : i32
    %20 = vector.broadcast %c1_i32_8 : i32 to vector<8x8xi32>
    %21 = arith.addi %11, %20 : vector<8x8xi32>
    %c0_i32_9 = arith.constant 0 : i32
    %22 = vector.broadcast %c0_i32_9 : i32 to vector<8x8xi32>
    %23 = arith.select %19, %22, %21 : vector<8x8xi1>, vector<8x8xi32>
    %c0_10 = arith.constant 0 : index
    %c0_11 = arith.constant 0 : index
    %c0_12 = arith.constant 0 : index
    %24 = vector.load %arg5[%c0_10, %c0_11, %c0_12] : memref<1x8x64xf32, #tpu.memory_space<vmem>>, vector<1x8x64xf32>
    %25 = vector.shape_cast %24 : vector<1x8x64xf32> to vector<8x64xf32>
    %26 = vector.extract_strided_slice %10 {offsets = [0, 0], sizes = [8, 64], strides = [1, 1]} : vector<16x384xf32> to vector<8x64xf32>
    %27 = vector.extract_strided_slice %10 {offsets = [0, 128], sizes = [8, 64], strides = [1, 1]} : vector<16x384xf32> to vector<8x64xf32>
    %28 = vector.extract_strided_slice %10 {offsets = [0, 256], sizes = [8, 64], strides = [1, 1]} : vector<16x384xf32> to vector<8x64xf32>
    %cst_13 = arith.constant dense<0.000000e+00> : vector<8x8xf32>
    %29 = tpu.matmul %26, %25, %cst_13 {dimension_numbers = #tpu.dot_dimension_numbers<[1], [1], [0], [0], [0, 0, 1, 0], [], []>} : vector<8x64xf32>, vector<8x64xf32>, vector<8x8xf32> -> vector<8x8xf32>
    %cst_14 = arith.constant 0.000000e+00 : f32
    %30 = vector.broadcast %cst_14 : f32 to vector<8x8xf32>
    %31 = arith.select %15, %29, %30 : vector<8x8xi1>, vector<8x8xf32>
    %32 = vector.extract_strided_slice %31 {offsets = [0, 7], sizes = [8, 1], strides = [1, 1]} : vector<8x8xf32> to vector<8x1xf32>
    %33 = vector.extract_strided_slice %31 {offsets = [0, 0], sizes = [8, 7], strides = [1, 1]} : vector<8x8xf32> to vector<8x7xf32>
    %34 = tpu.concatenate %32, %33 in 1 : vector<8x1xf32>, vector<8x7xf32> -> vector<8x8xf32>
    %c0_i32_15 = arith.constant 0 : i32
    %35 = vector.broadcast %c0_i32_15 : i32 to vector<8x8xi32>
    %36 = arith.shrsi %23, %35 : vector<8x8xi32>
    %c1_i32_16 = arith.constant 1 : i32
    %37 = vector.broadcast %c1_i32_16 : i32 to vector<8x8xi32>
    %38 = arith.andi %36, %37 : vector<8x8xi32>
    %c1_i32_17 = arith.constant 1 : i32
    %39 = vector.broadcast %c1_i32_17 : i32 to vector<8x8xi32>
    %40 = arith.cmpi eq, %38, %39 : vector<8x8xi32>
    %41 = arith.select %40, %34, %31 : vector<8x8xi1>, vector<8x8xf32>
    %42 = vector.extract_strided_slice %41 {offsets = [0, 6], sizes = [8, 2], strides = [1, 1]} : vector<8x8xf32> to vector<8x2xf32>
    %43 = vector.extract_strided_slice %41 {offsets = [0, 0], sizes = [8, 6], strides = [1, 1]} : vector<8x8xf32> to vector<8x6xf32>
    %44 = tpu.concatenate %42, %43 in 1 : vector<8x2xf32>, vector<8x6xf32> -> vector<8x8xf32>
    %c1_i32_18 = arith.constant 1 : i32
    %45 = vector.broadcast %c1_i32_18 : i32 to vector<8x8xi32>
    %46 = arith.shrsi %23, %45 : vector<8x8xi32>
    %c1_i32_19 = arith.constant 1 : i32
    %47 = vector.broadcast %c1_i32_19 : i32 to vector<8x8xi32>
    %48 = arith.andi %46, %47 : vector<8x8xi32>
    %c1_i32_20 = arith.constant 1 : i32
    %49 = vector.broadcast %c1_i32_20 : i32 to vector<8x8xi32>
    %50 = arith.cmpi eq, %48, %49 : vector<8x8xi32>
    %51 = arith.select %50, %44, %41 : vector<8x8xi1>, vector<8x8xf32>
    %52 = vector.extract_strided_slice %51 {offsets = [0, 4], sizes = [8, 4], strides = [1, 1]} : vector<8x8xf32> to vector<8x4xf32>
    %53 = vector.extract_strided_slice %51 {offsets = [0, 0], sizes = [8, 4], strides = [1, 1]} : vector<8x8xf32> to vector<8x4xf32>
    %54 = tpu.concatenate %52, %53 in 1 : vector<8x4xf32>, vector<8x4xf32> -> vector<8x8xf32>
    %c2_i32 = arith.constant 2 : i32
    %55 = vector.broadcast %c2_i32 : i32 to vector<8x8xi32>
    %56 = arith.shrsi %23, %55 : vector<8x8xi32>
    %c1_i32_21 = arith.constant 1 : i32
    %57 = vector.broadcast %c1_i32_21 : i32 to vector<8x8xi32>
    %58 = arith.andi %56, %57 : vector<8x8xi32>
    %c1_i32_22 = arith.constant 1 : i32
    %59 = vector.broadcast %c1_i32_22 : i32 to vector<8x8xi32>
    %60 = arith.cmpi eq, %58, %59 : vector<8x8xi32>
    %61 = arith.select %60, %54, %51 : vector<8x8xi1>, vector<8x8xf32>
    %cst_23 = arith.constant dense<0.000000e+00> : vector<8x8xf32>
    %62 = tpu.matmul %26, %27, %cst_23 {dimension_numbers = #tpu.dot_dimension_numbers<[1], [1], [0], [0], [0, 0, 1, 0], [], []>} : vector<8x64xf32>, vector<8x64xf32>, vector<8x8xf32> -> vector<8x8xf32>
    %63 = arith.addf %62, %61 : vector<8x8xf32>
    %cst_24 = arith.constant 1.250000e-01 : f32
    %64 = vector.broadcast %cst_24 : f32 to vector<8x8xf32>
    %65 = arith.mulf %63, %64 : vector<8x8xf32>
    %cst_25 = arith.constant dense<0xFF800000> : vector<8xf32>
    %66 = vector.multi_reduction <maximumf>, %65, %cst_25 [1] : vector<8x8xf32> to vector<8xf32>
    %67 = vector.shape_cast %66 : vector<8xf32> to vector<8x1xf32>
    %68 = vector.broadcast %67 : vector<8x1xf32> to vector<8x8xf32>
    %69 = arith.subf %65, %68 : vector<8x8xf32>
    %70 = math.exp %69 : vector<8x8xf32>
    %cst_26 = arith.constant dense<0.000000e+00> : vector<8xf32>
    %71 = vector.multi_reduction <add>, %70, %cst_26 [1] : vector<8x8xf32> to vector<8xf32>
    %72 = vector.shape_cast %71 : vector<8xf32> to vector<8x1xf32>
    %73 = vector.broadcast %72 : vector<8x1xf32> to vector<8x8xf32>
    %74 = arith.divf %70, %73 : vector<8x8xf32>
    %cst_27 = arith.constant dense<0.000000e+00> : vector<8x64xf32>
    %75 = tpu.matmul %74, %28, %cst_27 {dimension_numbers = #tpu.dot_dimension_numbers<[1], [0], [0], [1], [0, 0, 1, 1], [], []>} : vector<8x8xf32>, vector<8x64xf32>, vector<8x64xf32> -> vector<8x64xf32>
    %76 = vector.extract_strided_slice %74 {offsets = [0, 0], sizes = [1, 8], strides = [1, 1]} : vector<8x8xf32> to vector<1x8xf32>
    %77 = vector.extract_strided_slice %74 {offsets = [1, 0], sizes = [1, 8], strides = [1, 1]} : vector<8x8xf32> to vector<1x8xf32>
    %78 = vector.extract_strided_slice %74 {offsets = [2, 0], sizes = [1, 8], strides = [1, 1]} : vector<8x8xf32> to vector<1x8xf32>
    %79 = vector.extract_strided_slice %74 {offsets = [3, 0], sizes = [1, 8], strides = [1, 1]} : vector<8x8xf32> to vector<1x8xf32>
    %80 = vector.extract_strided_slice %74 {offsets = [4, 0], sizes = [1, 8], strides = [1, 1]} : vector<8x8xf32> to vector<1x8xf32>
    %81 = vector.extract_strided_slice %74 {offsets = [5, 0], sizes = [1, 8], strides = [1, 1]} : vector<8x8xf32> to vector<1x8xf32>
    %82 = vector.extract_strided_slice %74 {offsets = [6, 0], sizes = [1, 8], strides = [1, 1]} : vector<8x8xf32> to vector<1x8xf32>
    %83 = vector.extract_strided_slice %74 {offsets = [7, 0], sizes = [1, 8], strides = [1, 1]} : vector<8x8xf32> to vector<1x8xf32>
    %84 = vector.extract_strided_slice %10 {offsets = [0, 64], sizes = [8, 64], strides = [1, 1]} : vector<16x384xf32> to vector<8x64xf32>
    %85 = vector.extract_strided_slice %10 {offsets = [0, 192], sizes = [8, 64], strides = [1, 1]} : vector<16x384xf32> to vector<8x64xf32>
    %86 = vector.extract_strided_slice %10 {offsets = [0, 320], sizes = [8, 64], strides = [1, 1]} : vector<16x384xf32> to vector<8x64xf32>
    %cst_28 = arith.constant dense<0.000000e+00> : vector<8x8xf32>
    %87 = tpu.matmul %84, %25, %cst_28 {dimension_numbers = #tpu.dot_dimension_numbers<[1], [1], [0], [0], [0, 0, 1, 0], [], []>} : vector<8x64xf32>, vector<8x64xf32>, vector<8x8xf32> -> vector<8x8xf32>
    %cst_29 = arith.constant 0.000000e+00 : f32
    %88 = vector.broadcast %cst_29 : f32 to vector<8x8xf32>
    %89 = arith.select %15, %87, %88 : vector<8x8xi1>, vector<8x8xf32>
    %90 = vector.extract_strided_slice %89 {offsets = [0, 7], sizes = [8, 1], strides = [1, 1]} : vector<8x8xf32> to vector<8x1xf32>
    %91 = vector.extract_strided_slice %89 {offsets = [0, 0], sizes = [8, 7], strides = [1, 1]} : vector<8x8xf32> to vector<8x7xf32>
    %92 = tpu.concatenate %90, %91 in 1 : vector<8x1xf32>, vector<8x7xf32> -> vector<8x8xf32>
    %c0_i32_30 = arith.constant 0 : i32
    %93 = vector.broadcast %c0_i32_30 : i32 to vector<8x8xi32>
    %94 = arith.shrsi %23, %93 : vector<8x8xi32>
    %c1_i32_31 = arith.constant 1 : i32
    %95 = vector.broadcast %c1_i32_31 : i32 to vector<8x8xi32>
    %96 = arith.andi %94, %95 : vector<8x8xi32>
    %c1_i32_32 = arith.constant 1 : i32
    %97 = vector.broadcast %c1_i32_32 : i32 to vector<8x8xi32>
    %98 = arith.cmpi eq, %96, %97 : vector<8x8xi32>
    %99 = arith.select %98, %92, %89 : vector<8x8xi1>, vector<8x8xf32>
    %100 = vector.extract_strided_slice %99 {offsets = [0, 6], sizes = [8, 2], strides = [1, 1]} : vector<8x8xf32> to vector<8x2xf32>
    %101 = vector.extract_strided_slice %99 {offsets = [0, 0], sizes = [8, 6], strides = [1, 1]} : vector<8x8xf32> to vector<8x6xf32>
    %102 = tpu.concatenate %100, %101 in 1 : vector<8x2xf32>, vector<8x6xf32> -> vector<8x8xf32>
    %c1_i32_33 = arith.constant 1 : i32
    %103 = vector.broadcast %c1_i32_33 : i32 to vector<8x8xi32>
    %104 = arith.shrsi %23, %103 : vector<8x8xi32>
    %c1_i32_34 = arith.constant 1 : i32
    %105 = vector.broadcast %c1_i32_34 : i32 to vector<8x8xi32>
    %106 = arith.andi %104, %105 : vector<8x8xi32>
    %c1_i32_35 = arith.constant 1 : i32
    %107 = vector.broadcast %c1_i32_35 : i32 to vector<8x8xi32>
    %108 = arith.cmpi eq, %106, %107 : vector<8x8xi32>
    %109 = arith.select %108, %102, %99 : vector<8x8xi1>, vector<8x8xf32>
    %110 = vector.extract_strided_slice %109 {offsets = [0, 4], sizes = [8, 4], strides = [1, 1]} : vector<8x8xf32> to vector<8x4xf32>
    %111 = vector.extract_strided_slice %109 {offsets = [0, 0], sizes = [8, 4], strides = [1, 1]} : vector<8x8xf32> to vector<8x4xf32>
    %112 = tpu.concatenate %110, %111 in 1 : vector<8x4xf32>, vector<8x4xf32> -> vector<8x8xf32>
    %c2_i32_36 = arith.constant 2 : i32
    %113 = vector.broadcast %c2_i32_36 : i32 to vector<8x8xi32>
    %114 = arith.shrsi %23, %113 : vector<8x8xi32>
    %c1_i32_37 = arith.constant 1 : i32
    %115 = vector.broadcast %c1_i32_37 : i32 to vector<8x8xi32>
    %116 = arith.andi %114, %115 : vector<8x8xi32>
    %c1_i32_38 = arith.constant 1 : i32
    %117 = vector.broadcast %c1_i32_38 : i32 to vector<8x8xi32>
    %118 = arith.cmpi eq, %116, %117 : vector<8x8xi32>
    %119 = arith.select %118, %112, %109 : vector<8x8xi1>, vector<8x8xf32>
    %cst_39 = arith.constant dense<0.000000e+00> : vector<8x8xf32>
    %120 = tpu.matmul %84, %85, %cst_39 {dimension_numbers = #tpu.dot_dimension_numbers<[1], [1], [0], [0], [0, 0, 1, 0], [], []>} : vector<8x64xf32>, vector<8x64xf32>, vector<8x8xf32> -> vector<8x8xf32>
    %121 = arith.addf %120, %119 : vector<8x8xf32>
    %cst_40 = arith.constant 1.250000e-01 : f32
    %122 = vector.broadcast %cst_40 : f32 to vector<8x8xf32>
    %123 = arith.mulf %121, %122 : vector<8x8xf32>
    %cst_41 = arith.constant dense<0xFF800000> : vector<8xf32>
    %124 = vector.multi_reduction <maximumf>, %123, %cst_41 [1] : vector<8x8xf32> to vector<8xf32>
    %125 = vector.shape_cast %124 : vector<8xf32> to vector<8x1xf32>
    %126 = vector.broadcast %125 : vector<8x1xf32> to vector<8x8xf32>
    %127 = arith.subf %123, %126 : vector<8x8xf32>
    %128 = math.exp %127 : vector<8x8xf32>
    %cst_42 = arith.constant dense<0.000000e+00> : vector<8xf32>
    %129 = vector.multi_reduction <add>, %128, %cst_42 [1] : vector<8x8xf32> to vector<8xf32>
    %130 = vector.shape_cast %129 : vector<8xf32> to vector<8x1xf32>
    %131 = vector.broadcast %130 : vector<8x1xf32> to vector<8x8xf32>
    %132 = arith.divf %128, %131 : vector<8x8xf32>
    %cst_43 = arith.constant dense<0.000000e+00> : vector<8x64xf32>
    %133 = tpu.matmul %132, %86, %cst_43 {dimension_numbers = #tpu.dot_dimension_numbers<[1], [0], [0], [1], [0, 0, 1, 1], [], []>} : vector<8x8xf32>, vector<8x64xf32>, vector<8x64xf32> -> vector<8x64xf32>
    %134 = vector.extract_strided_slice %132 {offsets = [0, 0], sizes = [1, 8], strides = [1, 1]} : vector<8x8xf32> to vector<1x8xf32>
    %135 = vector.extract_strided_slice %132 {offsets = [1, 0], sizes = [1, 8], strides = [1, 1]} : vector<8x8xf32> to vector<1x8xf32>
    %136 = vector.extract_strided_slice %132 {offsets = [2, 0], sizes = [1, 8], strides = [1, 1]} : vector<8x8xf32> to vector<1x8xf32>
    %137 = vector.extract_strided_slice %132 {offsets = [3, 0], sizes = [1, 8], strides = [1, 1]} : vector<8x8xf32> to vector<1x8xf32>
    %138 = vector.extract_strided_slice %132 {offsets = [4, 0], sizes = [1, 8], strides = [1, 1]} : vector<8x8xf32> to vector<1x8xf32>
    %139 = vector.extract_strided_slice %132 {offsets = [5, 0], sizes = [1, 8], strides = [1, 1]} : vector<8x8xf32> to vector<1x8xf32>
    %140 = vector.extract_strided_slice %132 {offsets = [6, 0], sizes = [1, 8], strides = [1, 1]} : vector<8x8xf32> to vector<1x8xf32>
    %141 = vector.extract_strided_slice %132 {offsets = [7, 0], sizes = [1, 8], strides = [1, 1]} : vector<8x8xf32> to vector<1x8xf32>
    %142 = tpu.concatenate %75, %133 in 1 : vector<8x64xf32>, vector<8x64xf32> -> vector<8x128xf32>
    %143 = tpu.concatenate %76, %77, %78, %79, %80, %81, %82, %83, %134, %135, %136, %137, %138, %139, %140, %141 in 1 : vector<1x8xf32>, vector<1x8xf32>, vector<1x8xf32>, vector<1x8xf32>, vector<1x8xf32>, vector<1x8xf32>, vector<1x8xf32>, vector<1x8xf32>, vector<1x8xf32>, vector<1x8xf32>, vector<1x8xf32>, vector<1x8xf32>, vector<1x8xf32>, vector<1x8xf32>, vector<1x8xf32>, vector<1x8xf32> -> vector<1x128xf32>
    %144 = vector.extract_strided_slice %10 {offsets = [8, 0], sizes = [8, 64], strides = [1, 1]} : vector<16x384xf32> to vector<8x64xf32>
    %145 = vector.extract_strided_slice %10 {offsets = [8, 128], sizes = [8, 64], strides = [1, 1]} : vector<16x384xf32> to vector<8x64xf32>
    %146 = vector.extract_strided_slice %10 {offsets = [8, 256], sizes = [8, 64], strides = [1, 1]} : vector<16x384xf32> to vector<8x64xf32>
    %cst_44 = arith.constant dense<0.000000e+00> : vector<8x8xf32>
    %147 = tpu.matmul %144, %25, %cst_44 {dimension_numbers = #tpu.dot_dimension_numbers<[1], [1], [0], [0], [0, 0, 1, 0], [], []>} : vector<8x64xf32>, vector<8x64xf32>, vector<8x8xf32> -> vector<8x8xf32>
    %cst_45 = arith.constant 0.000000e+00 : f32
    %148 = vector.broadcast %cst_45 : f32 to vector<8x8xf32>
    %149 = arith.select %15, %147, %148 : vector<8x8xi1>, vector<8x8xf32>
    %150 = vector.extract_strided_slice %149 {offsets = [0, 7], sizes = [8, 1], strides = [1, 1]} : vector<8x8xf32> to vector<8x1xf32>
    %151 = vector.extract_strided_slice %149 {offsets = [0, 0], sizes = [8, 7], strides = [1, 1]} : vector<8x8xf32> to vector<8x7xf32>
    %152 = tpu.concatenate %150, %151 in 1 : vector<8x1xf32>, vector<8x7xf32> -> vector<8x8xf32>
    %c0_i32_46 = arith.constant 0 : i32
    %153 = vector.broadcast %c0_i32_46 : i32 to vector<8x8xi32>
    %154 = arith.shrsi %23, %153 : vector<8x8xi32>
    %c1_i32_47 = arith.constant 1 : i32
    %155 = vector.broadcast %c1_i32_47 : i32 to vector<8x8xi32>
    %156 = arith.andi %154, %155 : vector<8x8xi32>
    %c1_i32_48 = arith.constant 1 : i32
    %157 = vector.broadcast %c1_i32_48 : i32 to vector<8x8xi32>
    %158 = arith.cmpi eq, %156, %157 : vector<8x8xi32>
    %159 = arith.select %158, %152, %149 : vector<8x8xi1>, vector<8x8xf32>
    %160 = vector.extract_strided_slice %159 {offsets = [0, 6], sizes = [8, 2], strides = [1, 1]} : vector<8x8xf32> to vector<8x2xf32>
    %161 = vector.extract_strided_slice %159 {offsets = [0, 0], sizes = [8, 6], strides = [1, 1]} : vector<8x8xf32> to vector<8x6xf32>
    %162 = tpu.concatenate %160, %161 in 1 : vector<8x2xf32>, vector<8x6xf32> -> vector<8x8xf32>
    %c1_i32_49 = arith.constant 1 : i32
    %163 = vector.broadcast %c1_i32_49 : i32 to vector<8x8xi32>
    %164 = arith.shrsi %23, %163 : vector<8x8xi32>
    %c1_i32_50 = arith.constant 1 : i32
    %165 = vector.broadcast %c1_i32_50 : i32 to vector<8x8xi32>
    %166 = arith.andi %164, %165 : vector<8x8xi32>
    %c1_i32_51 = arith.constant 1 : i32
    %167 = vector.broadcast %c1_i32_51 : i32 to vector<8x8xi32>
    %168 = arith.cmpi eq, %166, %167 : vector<8x8xi32>
    %169 = arith.select %168, %162, %159 : vector<8x8xi1>, vector<8x8xf32>
    %170 = vector.extract_strided_slice %169 {offsets = [0, 4], sizes = [8, 4], strides = [1, 1]} : vector<8x8xf32> to vector<8x4xf32>
    %171 = vector.extract_strided_slice %169 {offsets = [0, 0], sizes = [8, 4], strides = [1, 1]} : vector<8x8xf32> to vector<8x4xf32>
    %172 = tpu.concatenate %170, %171 in 1 : vector<8x4xf32>, vector<8x4xf32> -> vector<8x8xf32>
    %c2_i32_52 = arith.constant 2 : i32
    %173 = vector.broadcast %c2_i32_52 : i32 to vector<8x8xi32>
    %174 = arith.shrsi %23, %173 : vector<8x8xi32>
    %c1_i32_53 = arith.constant 1 : i32
    %175 = vector.broadcast %c1_i32_53 : i32 to vector<8x8xi32>
    %176 = arith.andi %174, %175 : vector<8x8xi32>
    %c1_i32_54 = arith.constant 1 : i32
    %177 = vector.broadcast %c1_i32_54 : i32 to vector<8x8xi32>
    %178 = arith.cmpi eq, %176, %177 : vector<8x8xi32>
    %179 = arith.select %178, %172, %169 : vector<8x8xi1>, vector<8x8xf32>
    %cst_55 = arith.constant dense<0.000000e+00> : vector<8x8xf32>
    %180 = tpu.matmul %144, %145, %cst_55 {dimension_numbers = #tpu.dot_dimension_numbers<[1], [1], [0], [0], [0, 0, 1, 0], [], []>} : vector<8x64xf32>, vector<8x64xf32>, vector<8x8xf32> -> vector<8x8xf32>
    %181 = arith.addf %180, %179 : vector<8x8xf32>
    %cst_56 = arith.constant 1.250000e-01 : f32
    %182 = vector.broadcast %cst_56 : f32 to vector<8x8xf32>
    %183 = arith.mulf %181, %182 : vector<8x8xf32>
    %cst_57 = arith.constant dense<0xFF800000> : vector<8xf32>
    %184 = vector.multi_reduction <maximumf>, %183, %cst_57 [1] : vector<8x8xf32> to vector<8xf32>
    %185 = vector.shape_cast %184 : vector<8xf32> to vector<8x1xf32>
    %186 = vector.broadcast %185 : vector<8x1xf32> to vector<8x8xf32>
    %187 = arith.subf %183, %186 : vector<8x8xf32>
    %188 = math.exp %187 : vector<8x8xf32>
    %cst_58 = arith.constant dense<0.000000e+00> : vector<8xf32>
    %189 = vector.multi_reduction <add>, %188, %cst_58 [1] : vector<8x8xf32> to vector<8xf32>
    %190 = vector.shape_cast %189 : vector<8xf32> to vector<8x1xf32>
    %191 = vector.broadcast %190 : vector<8x1xf32> to vector<8x8xf32>
    %192 = arith.divf %188, %191 : vector<8x8xf32>
    %cst_59 = arith.constant dense<0.000000e+00> : vector<8x64xf32>
    %193 = tpu.matmul %192, %146, %cst_59 {dimension_numbers = #tpu.dot_dimension_numbers<[1], [0], [0], [1], [0, 0, 1, 1], [], []>} : vector<8x8xf32>, vector<8x64xf32>, vector<8x64xf32> -> vector<8x64xf32>
    %194 = vector.extract_strided_slice %192 {offsets = [0, 0], sizes = [1, 8], strides = [1, 1]} : vector<8x8xf32> to vector<1x8xf32>
    %195 = vector.extract_strided_slice %192 {offsets = [1, 0], sizes = [1, 8], strides = [1, 1]} : vector<8x8xf32> to vector<1x8xf32>
    %196 = vector.extract_strided_slice %192 {offsets = [2, 0], sizes = [1, 8], strides = [1, 1]} : vector<8x8xf32> to vector<1x8xf32>
    %197 = vector.extract_strided_slice %192 {offsets = [3, 0], sizes = [1, 8], strides = [1, 1]} : vector<8x8xf32> to vector<1x8xf32>
    %198 = vector.extract_strided_slice %192 {offsets = [4, 0], sizes = [1, 8], strides = [1, 1]} : vector<8x8xf32> to vector<1x8xf32>
    %199 = vector.extract_strided_slice %192 {offsets = [5, 0], sizes = [1, 8], strides = [1, 1]} : vector<8x8xf32> to vector<1x8xf32>
    %200 = vector.extract_strided_slice %192 {offsets = [6, 0], sizes = [1, 8], strides = [1, 1]} : vector<8x8xf32> to vector<1x8xf32>
    %201 = vector.extract_strided_slice %192 {offsets = [7, 0], sizes = [1, 8], strides = [1, 1]} : vector<8x8xf32> to vector<1x8xf32>
    %202 = vector.extract_strided_slice %10 {offsets = [8, 64], sizes = [8, 64], strides = [1, 1]} : vector<16x384xf32> to vector<8x64xf32>
    %203 = vector.extract_strided_slice %10 {offsets = [8, 192], sizes = [8, 64], strides = [1, 1]} : vector<16x384xf32> to vector<8x64xf32>
    %204 = vector.extract_strided_slice %10 {offsets = [8, 320], sizes = [8, 64], strides = [1, 1]} : vector<16x384xf32> to vector<8x64xf32>
    %cst_60 = arith.constant dense<0.000000e+00> : vector<8x8xf32>
    %205 = tpu.matmul %202, %25, %cst_60 {dimension_numbers = #tpu.dot_dimension_numbers<[1], [1], [0], [0], [0, 0, 1, 0], [], []>} : vector<8x64xf32>, vector<8x64xf32>, vector<8x8xf32> -> vector<8x8xf32>
    %cst_61 = arith.constant 0.000000e+00 : f32
    %206 = vector.broadcast %cst_61 : f32 to vector<8x8xf32>
    %207 = arith.select %15, %205, %206 : vector<8x8xi1>, vector<8x8xf32>
    %208 = vector.extract_strided_slice %207 {offsets = [0, 7], sizes = [8, 1], strides = [1, 1]} : vector<8x8xf32> to vector<8x1xf32>
    %209 = vector.extract_strided_slice %207 {offsets = [0, 0], sizes = [8, 7], strides = [1, 1]} : vector<8x8xf32> to vector<8x7xf32>
    %210 = tpu.concatenate %208, %209 in 1 : vector<8x1xf32>, vector<8x7xf32> -> vector<8x8xf32>
    %c0_i32_62 = arith.constant 0 : i32
    %211 = vector.broadcast %c0_i32_62 : i32 to vector<8x8xi32>
    %212 = arith.shrsi %23, %211 : vector<8x8xi32>
    %c1_i32_63 = arith.constant 1 : i32
    %213 = vector.broadcast %c1_i32_63 : i32 to vector<8x8xi32>
    %214 = arith.andi %212, %213 : vector<8x8xi32>
    %c1_i32_64 = arith.constant 1 : i32
    %215 = vector.broadcast %c1_i32_64 : i32 to vector<8x8xi32>
    %216 = arith.cmpi eq, %214, %215 : vector<8x8xi32>
    %217 = arith.select %216, %210, %207 : vector<8x8xi1>, vector<8x8xf32>
    %218 = vector.extract_strided_slice %217 {offsets = [0, 6], sizes = [8, 2], strides = [1, 1]} : vector<8x8xf32> to vector<8x2xf32>
    %219 = vector.extract_strided_slice %217 {offsets = [0, 0], sizes = [8, 6], strides = [1, 1]} : vector<8x8xf32> to vector<8x6xf32>
    %220 = tpu.concatenate %218, %219 in 1 : vector<8x2xf32>, vector<8x6xf32> -> vector<8x8xf32>
    %c1_i32_65 = arith.constant 1 : i32
    %221 = vector.broadcast %c1_i32_65 : i32 to vector<8x8xi32>
    %222 = arith.shrsi %23, %221 : vector<8x8xi32>
    %c1_i32_66 = arith.constant 1 : i32
    %223 = vector.broadcast %c1_i32_66 : i32 to vector<8x8xi32>
    %224 = arith.andi %222, %223 : vector<8x8xi32>
    %c1_i32_67 = arith.constant 1 : i32
    %225 = vector.broadcast %c1_i32_67 : i32 to vector<8x8xi32>
    %226 = arith.cmpi eq, %224, %225 : vector<8x8xi32>
    %227 = arith.select %226, %220, %217 : vector<8x8xi1>, vector<8x8xf32>
    %228 = vector.extract_strided_slice %227 {offsets = [0, 4], sizes = [8, 4], strides = [1, 1]} : vector<8x8xf32> to vector<8x4xf32>
    %229 = vector.extract_strided_slice %227 {offsets = [0, 0], sizes = [8, 4], strides = [1, 1]} : vector<8x8xf32> to vector<8x4xf32>
    %230 = tpu.concatenate %228, %229 in 1 : vector<8x4xf32>, vector<8x4xf32> -> vector<8x8xf32>
    %c2_i32_68 = arith.constant 2 : i32
    %231 = vector.broadcast %c2_i32_68 : i32 to vector<8x8xi32>
    %232 = arith.shrsi %23, %231 : vector<8x8xi32>
    %c1_i32_69 = arith.constant 1 : i32
    %233 = vector.broadcast %c1_i32_69 : i32 to vector<8x8xi32>
    %234 = arith.andi %232, %233 : vector<8x8xi32>
    %c1_i32_70 = arith.constant 1 : i32
    %235 = vector.broadcast %c1_i32_70 : i32 to vector<8x8xi32>
    %236 = arith.cmpi eq, %234, %235 : vector<8x8xi32>
    %237 = arith.select %236, %230, %227 : vector<8x8xi1>, vector<8x8xf32>
    %cst_71 = arith.constant dense<0.000000e+00> : vector<8x8xf32>
    %238 = tpu.matmul %202, %203, %cst_71 {dimension_numbers = #tpu.dot_dimension_numbers<[1], [1], [0], [0], [0, 0, 1, 0], [], []>} : vector<8x64xf32>, vector<8x64xf32>, vector<8x8xf32> -> vector<8x8xf32>
    %239 = arith.addf %238, %237 : vector<8x8xf32>
    %cst_72 = arith.constant 1.250000e-01 : f32
    %240 = vector.broadcast %cst_72 : f32 to vector<8x8xf32>
    %241 = arith.mulf %239, %240 : vector<8x8xf32>
    %cst_73 = arith.constant dense<0xFF800000> : vector<8xf32>
    %242 = vector.multi_reduction <maximumf>, %241, %cst_73 [1] : vector<8x8xf32> to vector<8xf32>
    %243 = vector.shape_cast %242 : vector<8xf32> to vector<8x1xf32>
    %244 = vector.broadcast %243 : vector<8x1xf32> to vector<8x8xf32>
    %245 = arith.subf %241, %244 : vector<8x8xf32>
    %246 = math.exp %245 : vector<8x8xf32>
    %cst_74 = arith.constant dense<0.000000e+00> : vector<8xf32>
    %247 = vector.multi_reduction <add>, %246, %cst_74 [1] : vector<8x8xf32> to vector<8xf32>
    %248 = vector.shape_cast %247 : vector<8xf32> to vector<8x1xf32>
    %249 = vector.broadcast %248 : vector<8x1xf32> to vector<8x8xf32>
    %250 = arith.divf %246, %249 : vector<8x8xf32>
    %cst_75 = arith.constant dense<0.000000e+00> : vector<8x64xf32>
    %251 = tpu.matmul %250, %204, %cst_75 {dimension_numbers = #tpu.dot_dimension_numbers<[1], [0], [0], [1], [0, 0, 1, 1], [], []>} : vector<8x8xf32>, vector<8x64xf32>, vector<8x64xf32> -> vector<8x64xf32>
    %252 = vector.extract_strided_slice %250 {offsets = [0, 0], sizes = [1, 8], strides = [1, 1]} : vector<8x8xf32> to vector<1x8xf32>
    %253 = vector.extract_strided_slice %250 {offsets = [1, 0], sizes = [1, 8], strides = [1, 1]} : vector<8x8xf32> to vector<1x8xf32>
    %254 = vector.extract_strided_slice %250 {offsets = [2, 0], sizes = [1, 8], strides = [1, 1]} : vector<8x8xf32> to vector<1x8xf32>
    %255 = vector.extract_strided_slice %250 {offsets = [3, 0], sizes = [1, 8], strides = [1, 1]} : vector<8x8xf32> to vector<1x8xf32>
    %256 = vector.extract_strided_slice %250 {offsets = [4, 0], sizes = [1, 8], strides = [1, 1]} : vector<8x8xf32> to vector<1x8xf32>
    %257 = vector.extract_strided_slice %250 {offsets = [5, 0], sizes = [1, 8], strides = [1, 1]} : vector<8x8xf32> to vector<1x8xf32>
    %258 = vector.extract_strided_slice %250 {offsets = [6, 0], sizes = [1, 8], strides = [1, 1]} : vector<8x8xf32> to vector<1x8xf32>
    %259 = vector.extract_strided_slice %250 {offsets = [7, 0], sizes = [1, 8], strides = [1, 1]} : vector<8x8xf32> to vector<1x8xf32>
    %260 = tpu.concatenate %193, %251 in 1 : vector<8x64xf32>, vector<8x64xf32> -> vector<8x128xf32>
    %261 = tpu.concatenate %194, %195, %196, %197, %198, %199, %200, %201, %252, %253, %254, %255, %256, %257, %258, %259 in 1 : vector<1x8xf32>, vector<1x8xf32>, vector<1x8xf32>, vector<1x8xf32>, vector<1x8xf32>, vector<1x8xf32>, vector<1x8xf32>, vector<1x8xf32>, vector<1x8xf32>, vector<1x8xf32>, vector<1x8xf32>, vector<1x8xf32>, vector<1x8xf32>, vector<1x8xf32>, vector<1x8xf32>, vector<1x8xf32> -> vector<1x128xf32>
    %262 = tpu.concatenate %142, %260 in 0 : vector<8x128xf32>, vector<8x128xf32> -> vector<16x128xf32>
    %263 = tpu.concatenate %143, %261 in 0 : vector<1x128xf32>, vector<1x128xf32> -> vector<2x128xf32>
    %c0_76 = arith.constant 0 : index
    %c0_77 = arith.constant 0 : index
    %c0_78 = arith.constant 0 : index
    %264 = vector.load %arg17[%c0_76, %c0_77, %c0_78] : memref<1x2x128xf32, #tpu.memory_space<vmem>>, vector<1x2x128xf32>
    %265 = vector.shape_cast %264 : vector<1x2x128xf32> to vector<2x128xf32>
    %266 = vector.shape_cast %263 : vector<2x128xf32> to vector<1x2x128xf32>
    tpu.vector_store %arg17[%c0_76, %c0_77, %c0_78], %266 {strides = array<i32>} : memref<1x2x128xf32, #tpu.memory_space<vmem>>, vector<1x2x128xf32>,
    %c0_79 = arith.constant 0 : index
    %c0_80 = arith.constant 0 : index
    %c0_81 = arith.constant 0 : index
    %267 = vector.load %arg6[%c0_79, %c0_80, %c0_81] : memref<1x128x128xf32, #tpu.memory_space<vmem>>, vector<1x128x128xf32>
    %268 = vector.shape_cast %267 : vector<1x128x128xf32> to vector<128x128xf32>
    %cst_82 = arith.constant dense<0.000000e+00> : vector<16x128xf32>
    %269 = tpu.matmul %262, %268, %cst_82 {dimension_numbers = #tpu.dot_dimension_numbers<[1], [0], [0], [1], [0, 0, 1, 1], [], []>} : vector<16x128xf32>, vector<128x128xf32>, vector<16x128xf32> -> vector<16x128xf32>
    %c0_83 = arith.constant 0 : index
    %c0_84 = arith.constant 0 : index
    %c0_85 = arith.constant 0 : index
    %270 = vector.load %arg7[%c0_83, %c0_84, %c0_85] : memref<1x1x128xf32, #tpu.memory_space<vmem>>, vector<1x1x128xf32>
    %271 = vector.shape_cast %270 : vector<1x1x128xf32> to vector<1x128xf32>
    %272 = vector.broadcast %271 : vector<1x128xf32> to vector<16x128xf32>
    %273 = arith.addf %269, %272 : vector<16x128xf32>
    %274 = arith.addf %273, %3 : vector<16x128xf32>
    %c0_86 = arith.constant 0 : index
    %c0_87 = arith.constant 0 : index
    %c0_88 = arith.constant 0 : index
    %275 = vector.load %arg8[%c0_86, %c0_87, %c0_88] : memref<1x1x128xf32, #tpu.memory_space<vmem>>, vector<1x1x128xf32>
    %276 = vector.shape_cast %275 : vector<1x1x128xf32> to vector<1x128xf32>
    %c0_89 = arith.constant 0 : index
    %c0_90 = arith.constant 0 : index
    %c0_91 = arith.constant 0 : index
    %277 = vector.load %arg9[%c0_89, %c0_90, %c0_91] : memref<1x1x128xf32, #tpu.memory_space<vmem>>, vector<1x1x128xf32>
    %278 = vector.shape_cast %277 : vector<1x1x128xf32> to vector<1x128xf32>
    %cst_92 = arith.constant dense<0.000000e+00> : vector<16xf32>
    %279 = vector.multi_reduction <add>, %274, %cst_92 [1] : vector<16x128xf32> to vector<16xf32>
    %280 = vector.shape_cast %279 : vector<16xf32> to vector<16x1xf32>
    %cst_93 = arith.constant 1.280000e+02 : f32
    %281 = vector.broadcast %cst_93 : f32 to vector<16x1xf32>
    %282 = arith.divf %280, %281 : vector<16x1xf32>
    %283 = vector.broadcast %282 : vector<16x1xf32> to vector<16x128xf32>
    %284 = arith.subf %274, %283 : vector<16x128xf32>
    %285 = arith.mulf %284, %284 : vector<16x128xf32>
    %cst_94 = arith.constant dense<0.000000e+00> : vector<16xf32>
    %286 = vector.multi_reduction <add>, %285, %cst_94 [1] : vector<16x128xf32> to vector<16xf32>
    %287 = vector.shape_cast %286 : vector<16xf32> to vector<16x1xf32>
    %cst_95 = arith.constant 1.280000e+02 : f32
    %288 = vector.broadcast %cst_95 : f32 to vector<16x1xf32>
    %289 = arith.divf %287, %288 : vector<16x1xf32>
    %cst_96 = arith.constant 9.99999997E-7 : f32
    %290 = vector.broadcast %cst_96 : f32 to vector<16x1xf32>
    %291 = arith.addf %289, %290 : vector<16x1xf32>
    %292 = math.rsqrt %291 : vector<16x1xf32>
    %293 = vector.broadcast %292 : vector<16x1xf32> to vector<16x128xf32>
    %294 = arith.mulf %284, %293 : vector<16x128xf32>
    %295 = vector.broadcast %276 : vector<1x128xf32> to vector<16x128xf32>
    %296 = arith.mulf %294, %295 : vector<16x128xf32>
    %297 = vector.broadcast %278 : vector<1x128xf32> to vector<16x128xf32>
    %298 = arith.addf %296, %297 : vector<16x128xf32>
    %c0_97 = arith.constant 0 : index
    %c0_98 = arith.constant 0 : index
    %c0_99 = arith.constant 0 : index
    %299 = vector.load %arg10[%c0_97, %c0_98, %c0_99] : memref<1x128x64xf32, #tpu.memory_space<vmem>>, vector<1x128x64xf32>
    %300 = vector.shape_cast %299 : vector<1x128x64xf32> to vector<128x64xf32>
    %cst_100 = arith.constant dense<0.000000e+00> : vector<16x64xf32>
    %301 = tpu.matmul %298, %300, %cst_100 {dimension_numbers = #tpu.dot_dimension_numbers<[1], [0], [0], [1], [0, 0, 1, 1], [], []>} : vector<16x128xf32>, vector<128x64xf32>, vector<16x64xf32> -> vector<16x64xf32>
    %c0_101 = arith.constant 0 : index
    %c0_102 = arith.constant 0 : index
    %c0_103 = arith.constant 0 : index
    %302 = vector.load %arg11[%c0_101, %c0_102, %c0_103] : memref<1x1x64xf32, #tpu.memory_space<vmem>>, vector<1x1x64xf32>
    %303 = vector.shape_cast %302 : vector<1x1x64xf32> to vector<1x64xf32>
    %304 = vector.broadcast %303 : vector<1x64xf32> to vector<16x64xf32>
    %305 = arith.addf %301, %304 : vector<16x64xf32>
    %cst_104 = arith.constant 0.000000e+00 : f32
    %306 = vector.broadcast %cst_104 : f32 to vector<16x64xf32>
    %307 = arith.maximumf %305, %306 : vector<16x64xf32>
    %c0_105 = arith.constant 0 : index
    %c0_106 = arith.constant 0 : index
    %c0_107 = arith.constant 0 : index
    %308 = vector.load %arg12[%c0_105, %c0_106, %c0_107] : memref<1x64x128xf32, #tpu.memory_space<vmem>>, vector<1x64x128xf32>
    %309 = vector.shape_cast %308 : vector<1x64x128xf32> to vector<64x128xf32>
    %cst_108 = arith.constant dense<0.000000e+00> : vector<16x128xf32>
    %310 = tpu.matmul %307, %309, %cst_108 {dimension_numbers = #tpu.dot_dimension_numbers<[1], [0], [0], [1], [0, 0, 1, 1], [], []>} : vector<16x64xf32>, vector<64x128xf32>, vector<16x128xf32> -> vector<16x128xf32>
    %c0_109 = arith.constant 0 : index
    %c0_110 = arith.constant 0 : index
    %c0_111 = arith.constant 0 : index
    %311 = vector.load %arg13[%c0_109, %c0_110, %c0_111] : memref<1x1x128xf32, #tpu.memory_space<vmem>>, vector<1x1x128xf32>
    %312 = vector.shape_cast %311 : vector<1x1x128xf32> to vector<1x128xf32>
    %313 = vector.broadcast %312 : vector<1x128xf32> to vector<16x128xf32>
    %314 = arith.addf %310, %313 : vector<16x128xf32>
    %315 = arith.addf %298, %314 : vector<16x128xf32>
    %c0_112 = arith.constant 0 : index
    %c0_113 = arith.constant 0 : index
    %c0_114 = arith.constant 0 : index
    %316 = vector.load %arg14[%c0_112, %c0_113, %c0_114] : memref<1x1x128xf32, #tpu.memory_space<vmem>>, vector<1x1x128xf32>
    %317 = vector.shape_cast %316 : vector<1x1x128xf32> to vector<1x128xf32>
    %c0_115 = arith.constant 0 : index
    %c0_116 = arith.constant 0 : index
    %c0_117 = arith.constant 0 : index
    %318 = vector.load %arg15[%c0_115, %c0_116, %c0_117] : memref<1x1x128xf32, #tpu.memory_space<vmem>>, vector<1x1x128xf32>
    %319 = vector.shape_cast %318 : vector<1x1x128xf32> to vector<1x128xf32>
    %cst_118 = arith.constant dense<0.000000e+00> : vector<16xf32>
    %320 = vector.multi_reduction <add>, %315, %cst_118 [1] : vector<16x128xf32> to vector<16xf32>
    %321 = vector.shape_cast %320 : vector<16xf32> to vector<16x1xf32>
    %cst_119 = arith.constant 1.280000e+02 : f32
    %322 = vector.broadcast %cst_119 : f32 to vector<16x1xf32>
    %323 = arith.divf %321, %322 : vector<16x1xf32>
    %324 = vector.broadcast %323 : vector<16x1xf32> to vector<16x128xf32>
    %325 = arith.subf %315, %324 : vector<16x128xf32>
    %326 = arith.mulf %325, %325 : vector<16x128xf32>
    %cst_120 = arith.constant dense<0.000000e+00> : vector<16xf32>
    %327 = vector.multi_reduction <add>, %326, %cst_120 [1] : vector<16x128xf32> to vector<16xf32>
    %328 = vector.shape_cast %327 : vector<16xf32> to vector<16x1xf32>
    %cst_121 = arith.constant 1.280000e+02 : f32
    %329 = vector.broadcast %cst_121 : f32 to vector<16x1xf32>
    %330 = arith.divf %328, %329 : vector<16x1xf32>
    %cst_122 = arith.constant 9.99999997E-7 : f32
    %331 = vector.broadcast %cst_122 : f32 to vector<16x1xf32>
    %332 = arith.addf %330, %331 : vector<16x1xf32>
    %333 = math.rsqrt %332 : vector<16x1xf32>
    %334 = vector.broadcast %333 : vector<16x1xf32> to vector<16x128xf32>
    %335 = arith.mulf %325, %334 : vector<16x128xf32>
    %336 = vector.broadcast %317 : vector<1x128xf32> to vector<16x128xf32>
    %337 = arith.mulf %335, %336 : vector<16x128xf32>
    %338 = vector.broadcast %319 : vector<1x128xf32> to vector<16x128xf32>
    %339 = arith.addf %337, %338 : vector<16x128xf32>
    %c0_123 = arith.constant 0 : index
    %c0_124 = arith.constant 0 : index
    %340 = vector.load %arg18[%c0_123, %c0_124] : memref<16x128xf32, #tpu.memory_space<vmem>>, vector<16x128xf32>
    tpu.vector_store %arg18[%c0_123, %c0_124], %339 {strides = array<i32>} : memref<16x128xf32, #tpu.memory_space<vmem>>, vector<16x128xf32>,
    %c1_i32_125 = arith.constant 1 : i32
    %341 = arith.cmpi eq, %arg1, %c1_i32_125 : i32
    %342 = arith.extui %341 : i1 to i32
    %c0_i32_126 = arith.constant 0 : i32
    %343 = arith.cmpi ne, %342, %c0_i32_126 : i32
    scf.if %343 {
      %c0_127 = arith.constant 0 : index
      %c0_128 = arith.constant 0 : index
      %344 = vector.load %arg16[%c0_127, %c0_128] : memref<16x128xf32, #tpu.memory_space<vmem>>, vector<16x128xf32>
      tpu.vector_store %arg16[%c0_127, %c0_128], %339 {strides = array<i32>} : memref<16x128xf32, #tpu.memory_space<vmem>>, vector<16x128xf32>,
    } else {
    }
    return
  }
  func.func @transform_0(%arg0: i32, %arg1: i32) -> (i32, i32) {
    %c0_i32 = arith.constant 0 : i32
    %c0_i32_0 = arith.constant 0 : i32
    return %arg0, %c0_i32 : i32, i32
  }
  func.func @transform_1(%arg0: i32, %arg1: i32) -> (i32, i32, i32) {
    %c0_i32 = arith.constant 0 : i32
    %c0_i32_0 = arith.constant 0 : i32
    %c0_i32_1 = arith.constant 0 : i32
    return %arg1, %c0_i32, %c0_i32_0 : i32, i32, i32
  }
  func.func @transform_2(%arg0: i32, %arg1: i32) -> (i32, i32, i32) {
    %c0_i32 = arith.constant 0 : i32
    %c0_i32_0 = arith.constant 0 : i32
    %c0_i32_1 = arith.constant 0 : i32
    return %arg1, %c0_i32, %c0_i32_0 : i32, i32, i32
  }
  func.func @transform_3(%arg0: i32, %arg1: i32) -> (i32, i32, i32) {
    %c0_i32 = arith.constant 0 : i32
    %c0_i32_0 = arith.constant 0 : i32
    %c0_i32_1 = arith.constant 0 : i32
    return %arg1, %c0_i32, %c0_i32_0 : i32, i32, i32
  }
  func.func @transform_4(%arg0: i32, %arg1: i32) -> (i32, i32, i32) {
    %c0_i32 = arith.constant 0 : i32
    %c0_i32_0 = arith.constant 0 : i32
    %c0_i32_1 = arith.constant 0 : i32
    return %arg1, %c0_i32, %c0_i32_0 : i32, i32, i32
  }
  func.func @transform_5(%arg0: i32, %arg1: i32) -> (i32, i32, i32) {
    %c0_i32 = arith.constant 0 : i32
    %c0_i32_0 = arith.constant 0 : i32
    %c0_i32_1 = arith.constant 0 : i32
    return %arg1, %c0_i32, %c0_i32_0 : i32, i32, i32
  }
  func.func @transform_6(%arg0: i32, %arg1: i32) -> (i32, i32, i32) {
    %c0_i32 = arith.constant 0 : i32
    %c0_i32_0 = arith.constant 0 : i32
    %c0_i32_1 = arith.constant 0 : i32
    return %arg1, %c0_i32, %c0_i32_0 : i32, i32, i32
  }
  func.func @transform_7(%arg0: i32, %arg1: i32) -> (i32, i32, i32) {
    %c0_i32 = arith.constant 0 : i32
    %c0_i32_0 = arith.constant 0 : i32
    %c0_i32_1 = arith.constant 0 : i32
    return %arg1, %c0_i32, %c0_i32_0 : i32, i32, i32
  }
  func.func @transform_8(%arg0: i32, %arg1: i32) -> (i32, i32, i32) {
    %c0_i32 = arith.constant 0 : i32
    %c0_i32_0 = arith.constant 0 : i32
    %c0_i32_1 = arith.constant 0 : i32
    return %arg1, %c0_i32, %c0_i32_0 : i32, i32, i32
  }
  func.func @transform_9(%arg0: i32, %arg1: i32) -> (i32, i32, i32) {
    %c0_i32 = arith.constant 0 : i32
    %c0_i32_0 = arith.constant 0 : i32
    %c0_i32_1 = arith.constant 0 : i32
    return %arg1, %c0_i32, %c0_i32_0 : i32, i32, i32
  }
  func.func @transform_10(%arg0: i32, %arg1: i32) -> (i32, i32, i32) {
    %c0_i32 = arith.constant 0 : i32
    %c0_i32_0 = arith.constant 0 : i32
    %c0_i32_1 = arith.constant 0 : i32
    return %arg1, %c0_i32, %c0_i32_0 : i32, i32, i32
  }
  func.func @transform_11(%arg0: i32, %arg1: i32) -> (i32, i32, i32) {
    %c0_i32 = arith.constant 0 : i32
    %c0_i32_0 = arith.constant 0 : i32
    %c0_i32_1 = arith.constant 0 : i32
    return %arg1, %c0_i32, %c0_i32_0 : i32, i32, i32
  }
  func.func @transform_12(%arg0: i32, %arg1: i32) -> (i32, i32, i32) {
    %c0_i32 = arith.constant 0 : i32
    %c0_i32_0 = arith.constant 0 : i32
    %c0_i32_1 = arith.constant 0 : i32
    return %arg1, %c0_i32, %c0_i32_0 : i32, i32, i32
  }
  func.func @transform_13(%arg0: i32, %arg1: i32) -> (i32, i32, i32) {
    %c0_i32 = arith.constant 0 : i32
    %c0_i32_0 = arith.constant 0 : i32
    %c0_i32_1 = arith.constant 0 : i32
    return %arg1, %c0_i32, %c0_i32_0 : i32, i32, i32
  }
  func.func @transform_14(%arg0: i32, %arg1: i32) -> (i32, i32) {
    %c0_i32 = arith.constant 0 : i32
    %c0_i32_0 = arith.constant 0 : i32
    return %arg0, %c0_i32 : i32, i32
  }
  func.func @transform_15(%arg0: i32, %arg1: i32) -> (i32, i32, i32) {
    %c0_i32 = arith.constant 0 : i32
    %c0_i32_0 = arith.constant 0 : i32
    return %arg1, %arg0, %c0_i32 : i32, i32, i32
  }
}

</mosaic_0001>

<bundles_post_ra>
// kernel: tpu_custom_call.1
= control target key start
LH: loop header
LB: loop body
LE: loop exit
PB: predicated region body
PF: predicated region fallthrough
CT: control target
= control target key end

     0   :  { %s4635_s0 = inlined_call_operand.hbm [shape: f32[16,128], index: 0, kind: input, shape index: {}]   ;;  %s4636_s1 = inlined_call_operand.hbm [shape: f32[2,128,384], index: 1, kind: input, shape index: {}]   ;;  %s4637_s2 = inlined_call_operand.vmem [shape: f32[2,1,384], index: 2, kind: input, shape index: {}]   ;;  %s4638_s3 = inlined_call_operand.hbm [shape: f32[2,8,64], index: 3, kind: input, shape index: {}]   ;;  %s4639_s4 = inlined_call_operand.vmem [shape: f32[2,128,128], index: 4, kind: input, shape index: {}]   ;;  %s4640_s5 = inlined_call_operand.vmem [shape: f32[2,1,128], index: 5, kind: input, shape index: {}]   ;;  %s4641_s6 = inlined_call_operand.vmem [shape: f32[2,1,128], index: 6, kind: input, shape index: {}]   ;;  %s4642_s7 = inlined_call_operand.vmem [shape: f32[2,1,128], index: 7, kind: input, shape index: {}]   ;;  %s4643_s8 = inlined_call_operand.vmem [shape: f32[2,128,64], index: 8, kind: input, shape index: {}]   ;;  %s4644_s9 = inlined_call_operand.vmem [shape: f32[2,1,64], index: 9, kind: input, shape index: {}]   ;;  %s4645_s10 = inlined_call_operand.vmem [shape: f32[2,64,128], index: 10, kind: input, shape index: {}]   ;;  %s4646_s11 = inlined_call_operand.vmem [shape: f32[2,1,128], index: 11, kind: input, shape index: {}]   ;;  %s4647_s12 = inlined_call_operand.vmem [shape: f32[2,1,128], index: 12, kind: input, shape index: {}]   ;;  %s4648_s13 = inlined_call_operand.vmem [shape: f32[2,1,128], index: 13, kind: input, shape index: {}]   ;;  %s4649_s14 = inlined_call_operand.hbm [shape: f32[16,128], index: 14, kind: output, shape index: {0}]   ;;  %s4650_s15 = inlined_call_operand.hbm [shape: f32[2,2,128], index: 15, kind: output, shape index: {1}]  }
   0x1   :  { %4675 = sst [smem:[#allocation27_spill]] %s4635_s0 }
   0x2   :  { %4676 = sst [smem:[#allocation28_spill]] %s4636_s1 }
   0x3   :  { %4677 = sst [smem:[#allocation29_spill]] %s4637_s2 }
   0x4   :  { %4678 = sst [smem:[#allocation30_spill]] %s4638_s3 }
   0x5   :  { %4679 = sst [smem:[#allocation31_spill]] %s4639_s4 }
   0x6   :  { %4680 = sst [smem:[#allocation32_spill]] %s4642_s7 }
   0x7   :  { %4681 = sst [smem:[#allocation33_spill]] %s4643_s8 }
   0x8   :  { %4682 = sst [smem:[#allocation34_spill]] %s4646_s11 }
   0x9   :  { %4683 = sst [smem:[#allocation35_spill]] %s4647_s12 }
   0xa   :  { %4684 = sst [smem:[#allocation36_spill]] %s4648_s13 }
   0xb   :  { %4685 = sst [smem:[#allocation37_spill]] %s4649_s14 }
   0xc   :  { %4686 = sst [smem:[#allocation38_spill]] %s4650_s15 }
   0xd   :  { %21 = vsyncpa [#allocation4], 0 }
   0xe   :  { %22 = vsyncpa [#allocation7], 0 }
   0xf   :  { %24 = vsyncpa [#allocation7 + $0x1], 0 }
  0x10   :  { %25 = vsyncpa [#allocation5], 0 }
  0x11   :  { %26 = vsyncpa [#allocation11], 0 }
  0x12   :  { %28 = vsyncpa [#allocation11 + $0x1], 0  ;;  %s3839_s18 = smov 0   ;;  %s3841_s19 = smov 0  }
  0x13   :  { %s3843_s20 = smov 0   ;;  %s3845_s21 = smov 0  }
  0x14   :  { %s3847_s22 = smov 0   ;;  %s3849_s23 = smov 0  }
  0x15 LB: > { %4687 = sst [smem:[#allocation16_spill]] %s3704_s18  ;;  %s43_s24 = sadd.s32 1, %s3720_s22  ;;  %s3724_s23 = sphi %s3849_s23, %s34_s23   ;;  %s3720_s22 = sphi %s3847_s22, %s4754_s22   ;;  %s3716_s21 = sphi %s3845_s21, %s4753_s21   ;;  %s3712_s20 = sphi %s3843_s20, %s4752_s20   ;;  %s3708_s19 = sphi %s3841_s19, %s4751_s19   ;;  %s3704_s18 = sphi %s3839_s18, %s4750_s18  }
  0x16   : > { %4688 = sst [smem:[#allocation17_spill]] %s3708_s19  ;;  %s79_s25 = sadd.s32 1, %s3712_s20 }
  0x17   : > { %4689 = sst [smem:[#allocation18_spill]] %s3712_s20  ;;  %p44_p0 = scmp.ge.s32.totalorder %s43_s24, 2 }
  0x18   : > { %4690 = sst [smem:[#allocation19_spill]] %s3720_s22  ;;  %p86_p1 = scmp.ne.s32.totalorder %s3712_s20, %s3708_s19 }
  0x19   : > { %4691 = sst [smem:[#allocation20_spill]] %s3724_s23  ;;  %p87_p2 = scmp.eq.s32.totalorder %s3724_s23, 0 }
  0x1a   : > { %s4756_s24 = smov (%p44_p0, %s43_s24), 0  ;;  %p3408_p5 = scmp.lt.s32.totalorder %s3724_s23, 2 }
  0x1b   : > { %4692 = sst [smem:[#allocation21_spill]] %s4756_s24  ;;  %p88_p4 = por %p87_p2, %p86_p1 }
  0x1c   : > { %s76_s26 = ssub.s32 %s3720_s22, %s4756_s24  ;;  %s498_s27 = sand.u32 1, %s3724_s23  }
  0x1d   : > { %p77_p6 = scmp.eq.s32.totalorder %s76_s26, 0  ;;  %s4653_s28 = sand.u32 1, %s3712_s20  }
  0x1e   : > { %s3375_s29 = smul.u32 6144, %s3720_s22  ;;  %s4694_s1 = sld [smem:[#allocation28_spill]] }
  0x1f   : > { %s3887_s30 = scalar_select %p77_p6, %s3712_s20, %s79_s25  }
  0x20   : > { %s3374_s16 = smul.u32 384, %s4653_s28  ;;  %p3896_p7 = pnand %p3408_p5, %p88_p4 }
  0x21   : > { %4693 = sst [smem:[#allocation22_spill]] %s3887_s30  ;;  %s3902_s28 = scalar_lea.sflag [#allocation7], %s498_s27 }
  0x22   : > { %s4695_s13 = scalar_select %p3896_p7, 1, 0 }
  0x23   : > { %s502_s26 = scalar_lea.vmem [#allocation6], %s3374_s16  ;;  %p4665_p9 = pneg %p3896_p7 }
  0x24   : > { %s3894_s14 = scalar_lea.hbm %s4694_s1, %s3375_s29  ;;  %s509_s25 = sshll.u32 %s502_s26, 4  ;;  %s3900_s25 = int_to_ptr.vmem [resolvable:$true] %s509_s25 }
  0x25   : > { %s3520_s24 = scalar_lea.hbm %s3894_s14, 6144  ;;  %s3525_s17 = scalar_lea.hbm %s4694_s1, 12288 }
  0x26   : > { %p3521_p8 = scmp.ne.s32.totalorder %s3894_s14, %s3520_s24  ;;  %p3526_p12 = scmp.lt.u32.totalorder %s3894_s14, %s4694_s1 }
  0x27   : > { %p3527_p13 = scmp.lt.u32.totalorder %s3525_s17, %s3520_s24  ;;  %p3529_p2 = scmp.lt.u32.totalorder %s3520_s24, %s3894_s14 }
  0x28   : > { %p3523_p10 = pnand %p4665_p9, %p3521_p8 }
  0x29   : > { %p3528_p0 = por %p3527_p13, %p3526_p12 }
  0x2a   : > { %p3524_p11 = pneg %p3523_p10 }
  0x2b   : > { %p3530_p4 = por %p3529_p2, %p3528_p0 }
  0x2d   : > { %p3531_p5 = pnand %p3530_p4, %p3524_p11 }
  0x2f   : > { %3534 = shalt.err (!%p3531_p5)
}
  0x30   : > { %s3535_s27 = scalar_lea.vmem %s3900_s25, 6144  ;;  %s3726_s16 = smov [#allocation6]  }
  0x31   : > { %p3536_p6 = scmp.ne.s32.totalorder %s3900_s25, %s3535_s27  ;;  %s3540_s26 = sshll.u32 %s3726_s16, 4  ;;  %s3541_s26 = int_to_ptr.vmem [resolvable:$false] %s3540_s26 }
  0x32   : > { %s3542_s12 = scalar_lea.vmem %s3541_s26, 12288  ;;  %p3543_p3 = scmp.lt.s32.totalorder %s3900_s25, %s3541_s26 }
  0x33   : > { %p3538_p8 = pnand %p3536_p6, %p4665_p9  ;;  %p3544_p12 = scmp.lt.s32.totalorder %s3542_s12, %s3535_s27 }
  0x35   : > { %p3539_p10 = pneg %p3538_p8  ;;  %p3545_p13 = por %p3544_p12, %p3543_p3 }
  0x37   : > { %p3546_p0 = pnand %p3545_p13, %p3539_p10 }
  0x39   : > { %3549 = shalt.err (!%p3546_p0)
}
  0x3a   : > { %s3727_s24 = smov 384   ;;  %s3728_s30 = smov 24  }
  0x3b   : > { %3399 = dma.hbm_to_vmem [thread:$0]  (!%p3896_p7), %s3894_s14, 6144, %s3900_s25, %s3902_s28, %s3727_s24, %s3727_s24, %s3728_s30  }
  0x3c   : > { %s3931_s15 = sadd.s32 4294967295, %s3724_s23   ;;  %s2901_s29 = sadd.s32 4294967294, %s3724_s23  }
  0x3d   : > { %4696 = sst [smem:[#allocation23_spill]] %s3931_s15  ;;  %p92_p3 = scmp.ne.s32.totalorder %s3708_s19, %s3704_s18 }
  0x3e   : > { %p4664_p11 = scmp.eq.s32.totalorder %s3931_s15, 0  ;;  %p4663_p2 = scmp.eq.s32.totalorder %s3931_s15, 1 }
  0x3f   : > { %p462_p4 = scmp.eq.s32.totalorder %s2901_s29, 1  ;;  %p2902_p5 = scmp.ge.s32.totalorder %s3724_s23, 1 }
  0x40   : > { %p3941_p6 = por %p4664_p11, %p92_p3  ;;  %p3950_p8 = por %p4663_p2, %p86_p1 }
  0x41   : > { %p3954_p10 = por %p462_p4, %p92_p3  ;;  %p469_p12 = scmp.lt.s32.totalorder %s3724_s23, 3 }
  0x42   : > { %s4697_s17 = scalar_select %p3941_p6, 1, 0 }
  0x43   : > { %s4698_s14 = scalar_select %p3950_p8, 1, 0 }
  0x44   : > { %s4700_s25 = scalar_select %p3954_p10, 1, 0 }
  0x45   : > { %4699 = sst [smem:[#allocation24_spill]] %s4698_s14  ;;  %p3959_p13 = pnand %p2902_p5, %p469_p12 }
  0x46   : > { %4701 = sst [smem:[#allocation25_spill]] %s4700_s25  ;;  %s3729_s16 = smov [#allocation3]  }
  0x47   : > { %s4702_s27 = scalar_select %p3959_p13, 1, 0 }
  0x48   : > { %s484_s26 = sshll.u32 %s3729_s16, 4  ;;  %p3392_p0 = pneg %p3959_p13  ;;  %s3963_s26 = int_to_ptr.vmem [resolvable:$true] %s484_s26 }
  0x49   : > { %s4703_s12 = sand.u32 1, %s3712_s20   ;;  %s2907_s30 = sshll.u32 %s3720_s22, 7 }
  0x4a   : > { %s2906_s24 = sshll.u32 %s4703_s12, 3  ;;  %p3972_p1 = pnand %p3392_p0, %p4664_p11 }
  0x4b   : > { %s4705_s3 = sld [smem:[#allocation30_spill]]  ;;  %s530_s18 = scalar_lea.vmem [#allocation8], %s2906_s24 }
  0x4c   : > { %s537_s16 = sshll.u32 %s530_s18, 4  ;;  %s4706_s0 = sld [smem:[#allocation27_spill]]  ;;  %s3981_s16 = int_to_ptr.vmem [resolvable:$true] %s537_s16 }
  0x4d   : > { %p3552_p4 = pneg %p3972_p1 }
  0x51   : > { %s3979_s25 = scalar_lea.hbm %s4705_s3, %s2907_s30 }
  0x52   : > { %s3550_s12 = scalar_lea.hbm %s4706_s0, 256 }
  0x53   : > { %p3551_p3 = scmp.ne.s32.totalorder %s4706_s0, %s3550_s12  ;;  %p3557_p0 = scmp.lt.u32.totalorder %s3550_s12, %s4706_s0 }
  0x55   : > { %p3553_p5 = pnand %p3552_p4, %p3551_p3 }
  0x57   : > { %p3554_p12 = pneg %p3553_p5 }
  0x59   : > { %p3559_p2 = pnand %p3557_p0, %p3554_p12 }
  0x5b   : > { %3562 = shalt.err (!%p3559_p2)
}
  0x5c   : > { %s3563_s18 = scalar_lea.vmem %s3963_s26, 256  ;;  %p3571_p8 = scmp.lt.s32.totalorder %s3963_s26, %s3963_s26 }
  0x5d   : > { %p3564_p11 = scmp.ne.s32.totalorder %s3963_s26, %s3563_s18  ;;  %p3572_p6 = scmp.lt.s32.totalorder %s3563_s18, %s3563_s18 }
  0x5f   : > { %p3566_p9 = pnand %p3564_p11, %p3552_p4  ;;  %p3573_p13 = por %p3572_p6, %p3571_p8 }
  0x61   : > { %p3567_p10 = pneg %p3566_p9 }
  0x63   : > { %p3574_p7 = pnand %p3573_p13, %p3567_p10 }
  0x65   : > { %3577 = shalt.err (!%p3574_p7)
}
  0x66   : > { %s3730_s11 = smov 128   ;;  %s3731_s20 = smov 8  }
  0x67   : > { %3395 = dma.hbm_to_vmem [thread:$0]  (!%p3972_p1), %s4706_s0, 256, %s3963_s26, [#allocation4], %s3730_s11, %s3730_s11, %s3731_s20  }
  0x68   : > { %s3578_s24 = scalar_lea.hbm %s3979_s25, 128  ;;  %p4707_p11 = scmp.ne.s32.totalorder %s4695_s13, 0 }
  0x69   : > { %p3579_p9 = scmp.ne.s32.totalorder %s3979_s25, %s3578_s24  ;;  %s3583_s1 = scalar_lea.hbm %s4705_s3, 256 }
  0x6a   : > { %p4708_p2 = pneg %p4707_p11  ;;  %p3584_p8 = scmp.lt.u32.totalorder %s3979_s25, %s4705_s3 }
  0x6b   : > { %p3585_p10 = scmp.lt.u32.totalorder %s3583_s1, %s3578_s24  ;;  %p3587_p3 = scmp.lt.u32.totalorder %s3578_s24, %s3979_s25 }
  0x6c   : > { %p3581_p6 = pnand %p3579_p9, %p4708_p2 }
  0x6d   : > { %p3586_p13 = por %p3585_p10, %p3584_p8 }
  0x6e   : > { %p3582_p7 = pneg %p3581_p6 }
  0x6f   : > { %p3588_p4 = por %p3587_p3, %p3586_p13 }
  0x71   : > { %p3589_p5 = pnand %p3588_p4, %p3582_p7 }
  0x73   : > { %3592 = shalt.err (!%p3589_p5)
}
  0x74   : > { %s3593_s26 = scalar_lea.vmem %s3981_s16, 128  ;;  %p4709_p12 = pmov %p4708_p2 }
  0x75   : > { %p3594_p1 = scmp.ne.s32.totalorder %s3981_s16, %s3593_s26  ;;  %s3732_s29 = smov [#allocation8]  }
  0x76   : > { %s3598_s11 = sshll.u32 %s3732_s29, 4  ;;  %s3599_s11 = int_to_ptr.vmem [resolvable:$false] %s3598_s11 }
  0x77   : > { %p3596_p0 = pnand %p3594_p1, %p4709_p12  ;;  %s3600_s20 = scalar_lea.vmem %s3599_s11, 256 }
  0x78   : > { %p3601_p2 = scmp.lt.s32.totalorder %s3981_s16, %s3599_s11  ;;  %p3602_p6 = scmp.lt.s32.totalorder %s3600_s20, %s3593_s26 }
  0x79   : > { %p3597_p9 = pneg %p3596_p0 }
  0x7a   : > { %p3603_p8 = por %p3602_p6, %p3601_p2 }
  0x7c   : > { %p3604_p10 = pnand %p3603_p8, %p3597_p9 }
  0x7e   : > { %3607 = shalt.err (!%p3604_p10)
}
  0x7f   : > { %3402 = dma.hbm_to_vmem [thread:$0]  (!%p4707_p11), %s3979_s25, 128, %s3981_s16, %s3902_s28  }
  0x80   : > { %p4710_p7 = scmp.ne.s32.totalorder %s4702_s27, 0 }
  0x82   : > { %612 = sbr.rel (%p4710_p7) target bundleno = 4658 (0x1232), region = 76 }
  0x89   : > { %p4711_p13 = scmp.eq.s32.totalorder %s3931_s15, 0 }
  0x8b   : > { %3687 = dma.done.wait (%p4711_p13), [#allocation4], 256   ;;  %p4712_p3 = pmov %p4711_p13 }
  0x8c   : > { %s618_s22 = sand.u32 1, %s3931_s15   ;;  %s4036_s14 = sand.u32 1, %s3708_s19  }
  0x8d   : > { %3689 = vsyncadd (%p4712_p3), [#allocation4], 4294967040  ;;  %4713 = sst [smem:[#allocation26_spill]] %s4036_s14  ;;  %s3376_s13 = smul.u32 384, %s4036_s14 }
  0x8e   : > { %s619_s24 = scalar_lea.sflag [#allocation7], %s618_s22  ;;  %p4714_p11 = scmp.ne.s32.totalorder %s4697_s17, 0 }
  0x8f   : > { %s4039_s30 = scalar_lea.vmem [#allocation6], %s3376_s13 }
  0x90   : > { %3691 = dma.done.wait (%p4714_p11), %s619_s24, 6272  }
  0x91   : > { %3693 = vsyncadd (%p4714_p11), %s619_s24, 4294961024  ;;  %s2910_s28 = sshll.u32 %s4036_s14, 3  ;;  %s2911_s25 = sshll.u32 %s4036_s14, 1 }
  0x92   : > { %p724_p4 = scmp.lt.s32.totalorder %s3716_s21, 1  ;;  %s4715_s4 = sld [smem:[#allocation31_spill]] }
  0x93   : > { %s4716_s2 = sld [smem:[#allocation29_spill]]  ;;  %s4718_s8 = sld [smem:[#allocation33_spill]] }
  0x94   : > { %s4049_s27 = scalar_select %p724_p4, %s3716_s21, 1 }
  0x95   : > { %s4719_s0 = sld [smem:[#allocation34_spill]]  ;;  %s4720_s15 = sld [smem:[#allocation35_spill]] }
  0x96   : > { %s3377_s17 = smul.u32 3, %s4049_s27  ;;  %s2955_s16 = sshll.u32 %s4049_s27, 7 }
  0x97   : > { %s749_s29 = scalar_lea.vmem %s4644_s9, %s4049_s27  ;;  %s2957_s11 = sshll.u32 %s4049_s27, 6 }
  0x98   : > { %s4056_s23 = scalar_lea.vmem %s4715_s4, %s2955_s16  ;;  %s4102_s18 = scalar_lea.vmem [#allocation8], %s2910_s28 }
  0x99   : > { %s4065_s22 = scalar_lea.vmem %s4716_s2, %s3377_s17  ;;  %s4078_s4 = scalar_lea.vmem %s4718_s8, %s2955_s16 }
  0x9a   : > { %s4088_s2 = scalar_lea.vmem %s4645_s10, %s2957_s11  ;;  %s4721_s8 = sld [smem:[#allocation36_spill]] }
  0x9b   : > { %s757_s3 = scalar_lea.vmem %s4719_s0, %s4049_s27  ;;  %s760_s12 = scalar_lea.vmem %s4720_s15, %s4049_s27 }
  0x9c   : > { %s4104_s26 = scalar_lea.vmem [#allocation10], %s2911_s25  ;;  %p2918_p5 = scmp.ne.s32.totalorder %s3716_s21, 0 }
  0x9d   : > { %v769_v0 = vld [vmem:[#allocation3] sm:$0xff] (!%p2918_p5)  ;;  %v770_v1 = vld [vmem:[#allocation3 + $0x8] sm:$0xff] (!%p2918_p5) }
  0x9e   : > { %768 = sbr.rel (%p2918_p5) target bundleno = 165 (0xa5), region = 92  ;;  %771 = vst [vmem:[#allocation2] sm:$0xff] (!%p2918_p5), %v769_v0  ;;  %772 = vst [vmem:[#allocation2 + $0x8] sm:$0xff] (!%p2918_p5), %v770_v1 }
  0xa0   : > { %s763_s7 = scalar_lea.vmem %s4721_s8, %s4049_s27 }
  0xa5 PF: > { %v776_v2 = vld [vmem:[%s4039_s30 + $0x8] sm:$0xff]  ;;  %v779_v3 = vld [vmem:[%s4039_s30 + $0x20] sm:$0xff]  ;;  %v778_v6 = vld [vmem:[%s4039_s30 + $0x18] sm:$0xff]  ;;  %v3733_v9 = vmov 0.0   ;;  %vm1002_vm0 = vcmask 523264   ;;  %vm3734_vm1 = vmmov 0   ;;  %v825_v54 = vlaneseq  ;;  %s4726_s11 = scalar_lea.vmem %s4640_s5, %s4049_s27 }
  0xa6   : > { %v775_v4 = vld [vmem:[%s4039_s30] sm:$0xff]  ;;  %v3230_v5 = vpack.c.bf16 %v779_v3, %v776_v2  ;;  %v782_v7 = vld [vmem:[%s4039_s30 + $0x38] sm:$0xff]  ;;  %v785_v8 = vld [vmem:[%s4039_s30 + $0x50] sm:$0xff]  ;;  %904 = vmatprep.mubr.f32.mxu0 %v3733_v9  ;;  %s3735_s0 = smov 121   ;;  %s3736_s8 = smov 1   ;;  %vm1087_vm4 = vcmask 7168  }
  0xa7   : > { %v3232_v10 = vpack.c.bf16 %v778_v6, %v775_v4  ;;  %v3234_v11 = vpack.c.bf16 %v785_v8, %v782_v7  ;;  %v781_v12 = vld [vmem:[%s4039_s30 + $0x30] sm:$0xff]  ;;  %v784_v13 = vld [vmem:[%s4039_s30 + $0x48] sm:$0xff]  ;;  %v791_v15 = vld [vmem:[%s4039_s30 + $0x80] sm:$0xff]  ;;  %v4157_v55 = vshrl.u32 %v825_v54, 7  ;;  %s3737_s15 = smov 122   ;;  %s3738_s14 = smov 2  }
  0xa8   : > { %v788_v14 = vld [vmem:[%s4039_s30 + $0x68] sm:$0xff]  ;;  %3231 = vmatprep.subr.bf16.mxu0 %v3230_v5  ;;  %v3236_v16 = vpack.c.bf16 %v784_v13, %v781_v12  ;;  %v787_v18 = vld [vmem:[%s4039_s30 + $0x60] sm:$0xff]  ;;  %v790_v19 = vld [vmem:[%s4039_s30 + $0x78] sm:$0xff]  ;;  %v995_v5 = vand.u32 127, %v825_v54  ;;  %vm1099_vm6 = vcmask 15360   ;;  %s3739_s28 = smov 4  }
  0xa9   : > { %3233 = vmatpush1.bf16.msra.mxu0 %v3232_v10  ;;  %v3238_v17 = vpack.c.bf16 %v791_v15, %v788_v14  ;;  %v794_v20 = vld [vmem:[%s4039_s30 + $0x98] sm:$0xff]  ;;  %v797_v21 = vld [vmem:[%s4039_s30 + $0xb0] sm:$0xff]  ;;  %v3240_v22 = vpack.c.bf16 %v790_v19, %v787_v18  ;;  %v796_v25 = vld [vmem:[%s4039_s30 + $0xa8] sm:$0xff]  ;;  %v827_v56 = vsub.s32 0, %v4157_v55  ;;  %v831_v58 = vsub.s32 1, %v4157_v55  ;;  %s3740_s25 = smov 124  }
  0xaa   : > { %3235 = vmatprep.subr.bf16.mxu0 %v3234_v11  ;;  %v3242_v23 = vpack.c.bf16 %v797_v21, %v794_v20  ;;  %v793_v24 = vld [vmem:[%s4039_s30 + $0x90] sm:$0xff]  ;;  %v800_v26 = vld [vmem:[%s4039_s30 + $0xc8] sm:$0xff]  ;;  %v803_v27 = vld [vmem:[%s4039_s30 + $0xe0] sm:$0xff]  ;;  %v996_v6 = vsub.s32 7, %v4157_v55  ;;  %v998_v14 = vadd.s32 1, %v4157_v55  ;;  %vm1112_vm8 = vcmask 31744  }
  0xab   : > { %v4126_v28 = vld [vmem:[#allocation2] sm:$0xff]  ;;  %v3244_v29 = vpack.c.bf16 %v796_v25, %v793_v24  ;;  %v3246_v30 = vpack.c.bf16 %v803_v27, %v800_v26  ;;  %v802_v32 = vld [vmem:[%s4039_s30 + $0xd8] sm:$0xff]  ;;  %v809_v34 = vld [vmem:[%s4039_s30 + $0x110] sm:$0xff]  ;;  %vm1192_vm10 = vcmask 64512   ;;  %s3742_s17 = smov 16   ;;  %s3743_s20 = smov 8  }
  0xac   : > { %3078 = vmatprep.mubr.f32.mxu1 %v4126_v28  ;;  %v799_v31 = vld [vmem:[%s4039_s30 + $0xc0] sm:$0xff]  ;;  %v806_v33 = vld [vmem:[%s4039_s30 + $0xf8] sm:$0xff]  ;;  %v805_v37 = vld [vmem:[%s4039_s30 + $0xf0] sm:$0xff]  ;;  %vm4189_vm2 = vcmp.ge.s32.totalorder %v995_v5, %v996_v6  ;;  %vm999_vm3 = vcmp.eq.s32.totalorder %v998_v14, 8  ;;  %s3744_s13 = smov 24   ;;  %s3745_s24 = smov 32  }
  0xad   : > { %3237 = vmatpush1.bf16.msra.mxu0 %v3236_v16  ;;  %v3248_v35 = vpack.c.bf16 %v802_v32, %v799_v31  ;;  %v3250_v36 = vpack.c.bf16 %v809_v34, %v806_v33  ;;  %v808_v38 = vld [vmem:[%s4039_s30 + $0x108] sm:$0xff]  ;;  %v815_v40 = vld [vmem:[%s4039_s30 + $0x140] sm:$0xff]  ;;  %v814_v44 = vld [vmem:[%s4039_s30 + $0x138] sm:$0xff]  ;;  %v4200_v15 = vsel %vm999_vm3, 0, %v998_v14  ;;  %s3746_s19 = smov 40   ;;  %s3748_s16 = smov 56  }
  0xae   : > { %3239 = vmatprep.subr.bf16.mxu0 %v3238_v17  ;;  %v812_v39 = vld [vmem:[%s4039_s30 + $0x128] sm:$0xff]  ;;  %v3252_v41 = vpack.c.bf16 %v808_v38, %v805_v37  ;;  %v811_v43 = vld [vmem:[%s4039_s30 + $0x120] sm:$0xff]  ;;  %v818_v45 = vld [vmem:[%s4039_s30 + $0x158] sm:$0xff]  ;;  %v1089_v16 = vand.u32 1, %v4200_v15  ;;  %vm1607_vm11 = vcmask 130048   ;;  %vm1609_vm12 = vcmask 195584  }
  0xaf   : > { %v3254_v42 = vpack.c.bf16 %v815_v40, %v812_v39  ;;  %v821_v46 = vld [vmem:[%s4039_s30 + $0x170] sm:$0xff]  ;;  %v3256_v47 = vpack.c.bf16 %v814_v44, %v811_v43  ;;  %v820_v50 = vld [vmem:[%s4039_s30 + $0x168] sm:$0xff]  ;;  %v4161_v57 = vld [vmem:[%s4065_s22] sm:$0x7]  ;;  %s3741_s22 = smov 64   ;;  %vm1611_vm13 = vcmask 261120  }
  0xb0   : > { %v3258_v48 = vpack.c.bf16 %v821_v46, %v818_v45  ;;  %v817_v49 = vld [vmem:[%s4039_s30 + $0x150] sm:$0xff]  ;;  %v4146_v52 = vld [vmem:[#allocation2 + $0x8] sm:$0xff]  ;;  %v828_v59 = vrot.slane %v4161_v57, %v827_v56  ;;  %v832_v60 = vrot.slane %v4161_v57, %v831_v58  ;;  %vm4203_vm5 = vcmp.eq.s32.totalorder %v1089_v16, 1  ;;  %v783_v27 = vld [vmem:[%s4039_s30 + $0x40] sm:$0xff]  ;;  %p2948_p1 = scmp.ne.s32.totalorder %s3716_s21, 1 }
  0xb1   : > { %3241 = vmatpush1.bf16.msra.mxu0 %v3240_v22  ;;  %v3260_v51 = vpack.c.bf16 %v820_v50, %v817_v49  ;;  %v4149_v53 = vld [vmem:[%s4102_s18] sm:$0xff]  ;;  %v1101_v22 = vshra.s32 %v4200_v15, 1  ;;  %v777_v25 = vld [vmem:[%s4039_s30 + $0x10] sm:$0xff]  ;;  %v798_v39 = vld [vmem:[%s4039_s30 + $0xb8] sm:$0xff]  ;;  %v1114_v56 = vshra.s32 %v4200_v15, 2  ;;  %vm1613_vm14 = vcmask 326656  }
  0xb2   : > { %3243 = vmatprep.subr.bf16.mxu0 %v3242_v23  ;;  %v780_v26 = vld [vmem:[%s4039_s30 + $0x28] sm:$0xff]  ;;  %v789_v32 = vld [vmem:[%s4039_s30 + $0x70] sm:$0xff]  ;;  %v795_v38 = vld [vmem:[%s4039_s30 + $0xa0] sm:$0xff]  ;;  %vm1615_vm15 = vcmask 392192   ;;  %vm1622_vm3 = vcmask 654336  }
  0xb3   : > { %v4213_v23 = vand.u32 1, %v1101_v22  ;;  %v792_v33 = vld [vmem:[%s4039_s30 + $0x88] sm:$0xff]  ;;  %v3274_v40 = vpack.c.bf16 %v798_v39, %v795_v38  ;;  %v807_v44 = vld [vmem:[%s4039_s30 + $0x100] sm:$0xff]  ;;  %v810_v45 = vld [vmem:[%s4039_s30 + $0x118] sm:$0xff]  ;;  %v4244_v58 = vand.u32 1, %v1114_v56 }
  0xb4   : > { %v3270_v37 = vpack.c.bf16 %v792_v33, %v789_v32  ;;  %v3282_v46 = vpack.c.bf16 %v810_v45, %v807_v44  ;;  %v819_v50 = vld [vmem:[%s4039_s30 + $0x160] sm:$0xff] }
  0xb5   : > { %3245 = vmatpush1.bf16.msra.mxu0 %v3244_v29  ;;  %v3262_v29 = vpack.c.bf16 %v780_v26, %v777_v25  ;;  %vm1103_vm7 = vcmp.eq.s32.totalorder %v4213_v23, 1  ;;  %vm1116_vm9 = vcmp.eq.s32.totalorder %v4244_v58, 1 }
  0xb6   : > { %3247 = vmatprep.subr.bf16.mxu0 %v3246_v30  ;;  %v786_v30 = vld [vmem:[%s4039_s30 + $0x58] sm:$0xff] }
  0xb7   : > { %v3266_v31 = vpack.c.bf16 %v786_v30, %v783_v27  ;;  %3263 = vmatprep.subr.bf16.mxu1 %v3262_v29 }
  0xb8   : > { %3265 = vmatpush3.bf16.msra.mxu1 %v3262_v29 }
  0xb9   : > { %3249 = vmatpush1.bf16.msra.mxu0 %v3248_v35  ;;  %3267 = vmatprep.subr.bf16.mxu1 %v3266_v31 }
  0xba   : > { %3251 = vmatprep.subr.bf16.mxu0 %v3250_v36 }
  0xbc   : > { %3269 = vmatpush3.bf16.msra.mxu1 %v3266_v31 }
  0xbd   : > { %3253 = vmatpush1.bf16.msra.mxu0 %v3252_v41  ;;  %3271 = vmatprep.subr.bf16.mxu1 %v3270_v37  ;;  %v801_v41 = vld [vmem:[%s4039_s30 + $0xd0] sm:$0xff] }
  0xbe   : > { %3255 = vmatprep.subr.bf16.mxu0 %v3254_v42  ;;  %v804_v42 = vld [vmem:[%s4039_s30 + $0xe8] sm:$0xff] }
  0xbf   : > { %v3278_v43 = vpack.c.bf16 %v804_v42, %v801_v41 }
  0xc0   : > { %3273 = vmatpush3.bf16.msra.mxu1 %v3270_v37 }
  0xc1   : > { %3257 = vmatpush1.bf16.msra.mxu0 %v3256_v47  ;;  %3275 = vmatprep.subr.bf16.mxu1 %v3274_v40  ;;  %v813_v47 = vld [vmem:[%s4039_s30 + $0x130] sm:$0xff] }
  0xc2   : > { %3259 = vmatprep.subr.bf16.mxu0 %v3258_v48  ;;  %v816_v48 = vld [vmem:[%s4039_s30 + $0x148] sm:$0xff] }
  0xc3   : > { %v3286_v49 = vpack.c.bf16 %v816_v48, %v813_v47 }
  0xc4   : > { %3277 = vmatpush3.bf16.msra.mxu1 %v3274_v40 }
  0xc5   : > { %3261 = vmatpush1.bf16.msra.mxu0 %v3260_v51  ;;  %3279 = vmatprep.subr.bf16.mxu1 %v3278_v43  ;;  %v822_v51 = vld [vmem:[%s4039_s30 + $0x178] sm:$0xff] }
  0xc6   : > { %3081 = vmatprep.subr.mxu0 %v3733_v9  ;;  %v3290_v54 = vpack.c.bf16 %v822_v51, %v819_v50 }
  0xc8   : > { %905 = vmatmul.mubr.f32.vlgmr.msra.gmra.mrb[0].mxu0 %v4126_v28  ;;  %3281 = vmatpush3.bf16.msra.mxu1 %v3278_v43 }
  0xc9   : > { %910 = vmatprep.mubr.f32.mxu0 %v3733_v9  ;;  %3283 = vmatprep.subr.bf16.mxu1 %v3282_v46 }
  0xcc   : > { %911 = vmatmul.mubr.f32.gmra.mrb[2].mxu0 %v4146_v52  ;;  %3285 = vmatpush3.bf16.msra.mxu1 %v3282_v46 }
  0xcd   : > { %3083 = vmatprep.mubr.msk.f32.mxu0 %vm3734_vm1, %v3733_v9  ;;  %3287 = vmatprep.subr.bf16.mxu1 %v3286_v49 }
  0xce   : > { %3082 = vmatpush3.xpose.msk.msra.mxu0 %vm1002_vm0, %v4149_v53 }
  0xcf   : > { %3086 = vmatprep.subr.mxu0 %v3733_v9 }
  0xd0   : > { %3289 = vmatpush3.bf16.msra.mxu1 %v3286_v49 }
  0xd1   : > { %3291 = vmatprep.subr.bf16.mxu1 %v3290_v54 }
  0xd4   : > { %3293 = vmatpush3.bf16.msra.mxu1 %v3290_v54 }
  0xd5   : > { %3091 = vmatprep.subr.mxu1 %v3733_v9 }
  0xd7   : > { %3079 = vmatmul.mubr.f32.vlgmr.msra.gmra.mrb[0].mxu1 %v4146_v52 }
  0xd8   : > { %3093 = vmatprep.mubr.msk.f32.mxu1 %vm3734_vm1, %v3733_v9 }
 0x19b   : > { %v906_v61 = vpop.f32.mrb[0].mxu0 }
 0x19c   : > { %v4166_v62 = vadd.f32 %v906_v61, %v828_v59  ;;  %v908_v63 = vpop.f32.mrb[1].mxu0 }
 0x19d   : > { %v4168_v0 = vadd.f32 %v908_v63, %v832_v60 }
 0x19e   : > { %3084 = vmatmul.mubr.msk.f32.vlgmr.msra.gmra.mrb[4].mxu0 %vm1002_vm0, %v4166_v62 }
 0x19f   : > { %3087 = vmatpush3.xpose.msk.msra.mxu0 %vm1002_vm0, %v4168_v0  ;;  %3088 = vmatprep.mubr.msk.f32.mxu0 %vm3734_vm1, %v3733_v9  ;;  %v912_v1 = vpop.f32.mrb[2].mxu0 }
 0x1a0   : > { %v4176_v2 = vadd.f32 %v912_v1, %v828_v59  ;;  %v914_v3 = vpop.f32.mrb[3].mxu0  ;;  %3096 = vmatprep.subr.mxu0 %v3733_v9 }
 0x1a1   : > { %v4179_v4 = vadd.f32 %v914_v3, %v832_v60 }
 0x1a2   : > { %3089 = vmatmul.mubr.msk.f32.vlgmr.msra.gmra.mrb[6].mxu0 %vm1002_vm0, %v4166_v62 }
 0x1a3   : > { %3097 = vmatpush3.xpose.msk.msra.mxu0 %vm1002_vm0, %v4149_v53  ;;  %3098 = vmatprep.mubr.msk.f32.mxu0 %vm3734_vm1, %v3733_v9 }
 0x1a4   : > { %3106 = vmatprep.subr.mxu0 %v3733_v9 }
 0x1aa   : > { %v3080_v15 = vpop.f32.mrb[0].mxu1 }
 0x1ab   : > { %v983_v16 = vpop.f32.mrb[1].mxu1 }
 0x271   : > { %v1075_v8 = vpop.f32.mrb[4].mxu0 }
 0x272   : > { %v1079_v10 = vsel %vm4189_vm2, %v1075_v8, 0.0  ;;  %v3085_v11 = vpop.f32.mrb[5].mxu0 }
 0x273   : > { %1081 = vrot.lane.b32.xlu0 %v1079_v10, %s3735_s0 }
 0x275   : > { %v4196_v12 = vpop.f32.mrb[6].mxu0 }
 0x276   : > { %v3090_v13 = vpop.f32.mrb[7].mxu0 }
 0x277   : > { %1084 = vrot.lane.b32.xlu0 %v1079_v10, %s3736_s8 }
 0x2e5   : > { %v1082_v17 = vpop.permute.xlu0 %1081 }
 0x2e9   : > { %v1085_v19 = vpop.permute.xlu0 %1084 }
 0x2ea   : > { %v1088_v20 = vsel %vm1087_vm4, %v1082_v17, %v1085_v19 }
 0x2eb   : > { %v1091_v21 = vsel %vm4203_vm5, %v1088_v20, %v1079_v10 }
 0x2ec   : > { %1093 = vrot.lane.b32.xlu1 %v1091_v21, %s3737_s15 }
 0x2f0   : > { %1096 = vrot.lane.b32.xlu1 %v1091_v21, %s3738_s14 }
 0x35e   : > { %v1094_v24 = vpop.permute.xlu1 %1093 }
 0x362   : > { %v1097_v34 = vpop.permute.xlu1 %1096 }
 0x363   : > { %v1100_v35 = vsel %vm1099_vm6, %v1094_v24, %v1097_v34 }
 0x364   : > { %v1104_v36 = vsel %vm1103_vm7, %v1100_v35, %v1091_v21 }
 0x365   : > { %1109 = vrot.lane.b32.xlu1 %v1104_v36, %s3739_s28  ;;  %1106 = vrot.lane.b32.xlu0 %v1104_v36, %s3740_s25 }
 0x369   : > { %1277 = vrot.lane.b32.xlu0 %v4166_v62, %s3741_s22 }
 0x3d7   : > { %v1110_v59 = vpop.permute.xlu1 %1109  ;;  %v1107_v60 = vpop.permute.xlu0 %1106 }
 0x3d8   : > { %v1113_v61 = vsel %vm1112_vm8, %v1107_v60, %v1110_v59 }
 0x3d9   : > { %v1117_v62 = vsel %vm1116_vm9, %v1113_v61, %v1104_v36 }
 0x3da   : > { %v1188_v63 = vadd.f32 %v4196_v12, %v1117_v62  ;;  %v835_v12 = vsub.s32 2, %v4157_v55 }
 0x3db   : > { %v1278_v1 = vpop.permute.xlu0 %1277 }
 0x3dc   : > { %3099 = vmatmul.mubr.msk.f32.vlgmr.msra.gmra.mrb[8].mxu0 %vm1002_vm0, %v1278_v1  ;;  %v1191_v3 = vmul.f32 0.125, %v1188_v63  ;;  %v836_v14 = vrot.slane %v4161_v57, %v835_v12 }
 0x3dd   : > { %3108 = vmatprep.mubr.msk.f32.mxu0 %vm3734_vm1, %v3733_v9 }
 0x3de   : > { %v1193_v5 = vsel %vm1192_vm10, %v1191_v3, -inf  ;;  %v984_v17 = vadd.f32 %v983_v16, %v836_v14  ;;  %v4261_v19 = vadd.f32 %v3080_v15, %v836_v14 }
 0x3df   : > { %1194 = vmax.xlane.f32.xlu1 %v1193_v5 }
 0x3e0   : > { %3092 = vmatpush3.msra.mxu1 %v984_v17 }
 0x3e1   : > { %3101 = vmatprep.subr.mxu1 %v3733_v9 }
 0x46c   : > { %v1195_v6 = vpop.xlane.xlu1 %1194 }
 0x46d   : > { %v1196_v8 = vsub.f32 %v1191_v3, %v1195_v6 }
 0x46f   : > { %v1197_v10 = vmul.f32 1.442695, %v1196_v8 }
 0x471   : > { %3496 = vpow2.f32 %v1197_v10 }
 0x47b   : > { %v3497_v11 = vpop.eup %3496 }
 0x47c   : > { %v1199_v13 = vsel %vm1192_vm10, %v3497_v11, 0.0 }
 0x47d   : > { %1200 = vadd.xlane.f32.xlu0 %v1199_v13 }
 0x493   : > { %1379 = vrot.lane.b32.xlu0 %v4168_v0, %s3741_s22 }
 0x4af   : > { %v1347_v20 = vpop.f32.mrb[8].mxu0 }
 0x4b0   : > { %v1351_v21 = vsel %vm4189_vm2, %v1347_v20, 0.0  ;;  %v3100_v22 = vpop.f32.mrb[9].mxu0 }
 0x4b1   : > { %1353 = vrot.lane.b32.xlu1 %v1351_v21, %s3735_s0 }
 0x4b5   : > { %1356 = vrot.lane.b32.xlu1 %v1351_v21, %s3736_s8 }
 0x50a   : > { %v1201_v55 = vpop.xlane.xlu0 %1200 }
 0x50b   : > { %3498 = vrcp.f32 %v1201_v55 }
 0x50e   : > { %v1380_v25 = vpop.permute.xlu0 %1379 }
 0x515   : > { %v3499_v57 = vpop.eup %3498 }
 0x516   : > { %v4267_v24 = vmul.f32 %v3499_v57, %v3497_v11 }
 0x518   : > { %3094 = vmatmul.mubr.msk.f32.vlgmr.msra.gmra.mrb[2].mxu1 %vm1192_vm10, %v4267_v24 }
 0x519   : > { %3102 = vmatpush3.xpose.msk.msra.mxu1 %vm1002_vm0, %v1380_v25  ;;  %3103 = vmatprep.mubr.msk.f32.mxu1 %vm3734_vm1, %v3733_v9 }
 0x51a   : > { %3111 = vmatprep.subr.mxu1 %v3733_v9 }
 0x51c   : > { %3104 = vmatmul.mubr.msk.f32.vlgmr.msra.gmra.mrb[4].mxu1 %vm1002_vm0, %v1278_v1 }
 0x51d   : > { %3112 = vmatpush3.xpose.msk.msra.mxu1 %vm1002_vm0, %v4149_v53  ;;  %3113 = vmatprep.mubr.msk.f32.mxu1 %vm3734_vm1, %v3733_v9 }
 0x51e   : > { %3121 = vmatprep.subr.mxu1 %v3733_v9 }
 0x520   : > { %3114 = vmatmul.mubr.msk.f32.vlgmr.msra.gmra.mrb[6].mxu1 %vm1002_vm0, %v4176_v2 }
 0x521   : > { %3122 = vmatpush3.msra.mxu1 %v4261_v19  ;;  %3123 = vmatprep.mubr.msk.f32.mxu1 %vm3734_vm1, %v3733_v9 }
 0x522   : > { %3131 = vmatprep.subr.mxu1 %v3733_v9 }
 0x523   : > { %v1354_v0 = vpop.permute.xlu1 %1353 }
 0x527   : > { %v1357_v26 = vpop.permute.xlu1 %1356 }
 0x528   : > { %v1359_v27 = vsel %vm1087_vm4, %v1354_v0, %v1357_v26 }
 0x529   : > { %v1360_v29 = vsel %vm4203_vm5, %v1359_v27, %v1351_v21 }
 0x52a   : > { %1365 = vrot.lane.b32.xlu1 %v1360_v29, %s3738_s14  ;;  %1362 = vrot.lane.b32.xlu0 %v1360_v29, %s3737_s15 }
 0x59c   : > { %v1366_v30 = vpop.permute.xlu1 %1365  ;;  %v1363_v31 = vpop.permute.xlu0 %1362 }
 0x59d   : > { %v1368_v32 = vsel %vm1099_vm6, %v1363_v31, %v1366_v30 }
 0x59e   : > { %v1369_v33 = vsel %vm1103_vm7, %v1368_v32, %v1360_v29 }
 0x59f   : > { %1374 = vrot.lane.b32.xlu1 %v1369_v33, %s3739_s28  ;;  %1371 = vrot.lane.b32.xlu0 %v1369_v33, %s3740_s25 }
 0x5eb   : > { %v4297_v34 = vpop.f32.mrb[2].mxu1 }
 0x5ec   : > { %v3095_v35 = vpop.f32.mrb[3].mxu1 }
 0x5ef   : > { %v1449_v36 = vpop.f32.mrb[4].mxu1 }
 0x5f0   : > { %v3105_v37 = vpop.f32.mrb[5].mxu1 }
 0x5f3   : > { %v1703_v38 = vpop.f32.mrb[6].mxu1 }
 0x5f4   : > { %v3115_v39 = vpop.f32.mrb[7].mxu1  ;;  %v1707_v47 = vsel %vm4189_vm2, %v1703_v38, 0.0 }
 0x611   : > { %v1375_v40 = vpop.permute.xlu1 %1374  ;;  %v1372_v41 = vpop.permute.xlu0 %1371 }
 0x612   : > { %v1377_v42 = vsel %vm1112_vm8, %v1372_v41, %v1375_v40 }
 0x613   : > { %v1378_v43 = vsel %vm1116_vm9, %v1377_v42, %v1369_v33 }
 0x614   : > { %v1450_v44 = vadd.f32 %v1449_v36, %v1378_v43 }
 0x616   : > { %v1453_v45 = vmul.f32 0.125, %v1450_v44 }
 0x618   : > { %v1454_v46 = vsel %vm1192_vm10, %v1453_v45, -inf }
 0x619   : > { %1455 = vmax.xlane.f32.xlu0 %v1454_v46 }
 0x62f   : > { %1466 = vrot.lane.b32.xlu0 %v984_v17, %s3741_s22 }
 0x633   : > { %1712 = vrot.lane.b32.xlu0 %v1707_v47, %s3736_s8 }
 0x6a6   : > { %v1456_v48 = vpop.xlane.xlu0 %1455 }
 0x6a7   : > { %v1457_v49 = vsub.f32 %v1453_v45, %v1456_v48 }
 0x6a9   : > { %v1458_v50 = vmul.f32 1.442695, %v1457_v49 }
 0x6aa   : > { %v1467_v51 = vpop.permute.xlu0 %1466 }
 0x6ab   : > { %3500 = vpow2.f32 %v1458_v50  ;;  %3107 = vmatpush3.msra.mxu0 %v1467_v51 }
 0x6ac   : > { %3116 = vmatprep.subr.mxu0 %v3733_v9 }
 0x6ae   : > { %v1713_v60 = vpop.permute.xlu0 %1712 }
 0x6b5   : > { %v3501_v54 = vpop.eup %3500 }
 0x6b6   : > { %v1460_v56 = vsel %vm1192_vm10, %v3501_v54, 0.0 }
 0x6b7   : > { %1461 = vadd.xlane.f32.xlu1 %v1460_v56 }
 0x6c8   : > { %1709 = vrot.lane.b32.xlu1 %v1707_v47, %s3735_s0 }
 0x744   : > { %v1462_v59 = vpop.xlane.xlu1 %1461 }
 0x745   : > { %3502 = vrcp.f32 %v1462_v59 }
 0x748   : > { %v1710_v61 = vpop.permute.xlu1 %1709 }
 0x749   : > { %v1715_v62 = vsel %vm1087_vm4, %v1710_v61, %v1713_v60 }
 0x74a   : > { %v1716_v63 = vsel %vm4203_vm5, %v1715_v62, %v1707_v47 }
 0x74b   : > { %1721 = vrot.lane.b32.xlu0 %v1716_v63, %s3738_s14  ;;  %1718 = vrot.lane.b32.xlu1 %v1716_v63, %s3737_s15 }
 0x74f   : > { %v3503_v1 = vpop.eup %3502 }
 0x750   : > { %v4315_v3 = vmul.f32 %v3503_v1, %v3501_v54  ;;  %v2244_v1 = vld [vmem:[%s4056_s23 + $0x8] sm:$0xff] }
 0x752   : > { %3109 = vmatmul.mubr.msk.f32.vlgmr.msra.gmra.mrb[10].mxu0 %vm1192_vm10, %v4315_v3 }
 0x753   : > { %3117 = vmatpush3.xpose.msk.msra.mxu0 %vm1002_vm0, %v4179_v4  ;;  %3118 = vmatprep.mubr.msk.f32.mxu0 %vm3734_vm1, %v3733_v9 }
 0x754   : > { %3126 = vmatprep.subr.mxu0 %v3733_v9 }
 0x756   : > { %3119 = vmatmul.mubr.msk.f32.vlgmr.msra.gmra.mrb[12].mxu0 %vm1002_vm0, %v4176_v2 }
 0x757   : > { %3127 = vmatpush3.xpose.msk.msra.mxu0 %vm1002_vm0, %v4149_v53  ;;  %3128 = vmatprep.mubr.msk.f32.mxu0 %vm3734_vm1, %v3733_v9 }
 0x758   : > { %3136 = vmatprep.subr.mxu0 %v3733_v9 }
 0x7bd   : > { %v1722_v5 = vpop.permute.xlu0 %1721  ;;  %v1719_v6 = vpop.permute.xlu1 %1718 }
 0x7be   : > { %v1724_v8 = vsel %vm1099_vm6, %v1719_v6, %v1722_v5  ;;  %v2245_v5 = vld [vmem:[%s4056_s23 + $0x10] sm:$0xff] }
 0x7bf   : > { %v1725_v10 = vsel %vm1103_vm7, %v1724_v8, %v1716_v63  ;;  %v2243_v63 = vld [vmem:[%s4056_s23] sm:$0xff]  ;;  %v2246_v8 = vld [vmem:[%s4056_s23 + $0x18] sm:$0xff] }
 0x7c0   : > { %1730 = vrot.lane.b32.xlu0 %v1725_v10, %s3739_s28  ;;  %1727 = vrot.lane.b32.xlu1 %v1725_v10, %s3740_s25  ;;  %v3294_v6 = vpack.c.bf16 %v2244_v1, %v2243_v63  ;;  %v1547_v63 = vrot.slane %v4267_v24, 1  ;;  %v2392_v1 = vld [vmem:[%s4078_s4 + $0x40] sm:$0xff] }
 0x7c4   : > { %1893 = vrot.lane.b32.xlu1 %v4176_v2, %s3741_s22 }
 0x825   : > { %v4338_v53 = vpop.f32.mrb[10].mxu0 }
 0x826   : > { %v3110_v11 = vpop.f32.mrb[11].mxu0 }
 0x827   : > { %v2248_v11 = vld [vmem:[%s4056_s23 + $0x28] sm:$0xff] }
 0x829   : > { %v1804_v13 = vpop.f32.mrb[12].mxu0 }
 0x82a   : > { %v3120_v12 = vpop.f32.mrb[13].mxu0 }
 0x82b   : > { %v2249_v12 = vld [vmem:[%s4056_s23 + $0x30] sm:$0xff] }
 0x832   : > { %v1731_v14 = vpop.permute.xlu0 %1730  ;;  %v1728_v15 = vpop.permute.xlu1 %1727 }
 0x833   : > { %v1733_v16 = vsel %vm1112_vm8, %v1728_v15, %v1731_v14  ;;  %v2250_v14 = vld [vmem:[%s4056_s23 + $0x38] sm:$0xff] }
 0x834   : > { %v1734_v17 = vsel %vm1116_vm9, %v1733_v16, %v1725_v10  ;;  %v2247_v10 = vld [vmem:[%s4056_s23 + $0x20] sm:$0xff]  ;;  %v3306_v15 = vpack.c.bf16 %v2250_v14, %v2249_v12  ;;  %v1555_v14 = vrot.slane %v4267_v24, 3 }
 0x835   : > { %v1805_v20 = vadd.f32 %v1804_v13, %v1734_v17  ;;  %v3302_v13 = vpack.c.bf16 %v2248_v11, %v2247_v10  ;;  %v2251_v16 = vld [vmem:[%s4056_s23 + $0x40] sm:$0xff]  ;;  %v2252_v17 = vld [vmem:[%s4056_s23 + $0x48] sm:$0xff]  ;;  %v2394_v10 = vld [vmem:[%s4078_s4 + $0x50] sm:$0xff] }
 0x836   : > { %v1894_v21 = vpop.permute.xlu1 %1893  ;;  %v2395_v11 = vld [vmem:[%s4078_s4 + $0x58] sm:$0xff] }
 0x837   : > { %3129 = vmatmul.mubr.msk.f32.vlgmr.msra.gmra.mrb[14].mxu0 %vm1002_vm0, %v1894_v21  ;;  %v1808_v22 = vmul.f32 0.125, %v1805_v20  ;;  %v3310_v20 = vpack.c.bf16 %v2252_v17, %v2251_v16  ;;  %v2397_v16 = vld [vmem:[%s4078_s4 + $0x68] sm:$0xff] }
 0x838   : > { %3138 = vmatprep.mubr.msk.f32.mxu0 %vm3734_vm1, %v3733_v9 }
 0x839   : > { %v1809_v2 = vsel %vm1192_vm10, %v1808_v22, -inf }
 0x83a   : > { %1810 = vmax.xlane.f32.xlu0 %v1809_v2 }
 0x850   : > { %1995 = vrot.lane.b32.xlu0 %v4179_v4, %s3741_s22 }
 0x8c7   : > { %v1811_v55 = vpop.xlane.xlu0 %1810 }
 0x8c8   : > { %v1812_v57 = vsub.f32 %v1808_v22, %v1811_v55  ;;  %v2254_v22 = vld [vmem:[%s4056_s23 + $0x58] sm:$0xff]  ;;  %v2255_v55 = vld [vmem:[%s4056_s23 + $0x60] sm:$0xff] }
 0x8ca   : > { %v1813_v25 = vmul.f32 1.442695, %v1812_v57  ;;  %v2256_v57 = vld [vmem:[%s4056_s23 + $0x68] sm:$0xff] }
 0x8cb   : > { %v1996_v33 = vpop.permute.xlu0 %1995 }
 0x8cc   : > { %3504 = vpow2.f32 %v1813_v25  ;;  %v3318_v25 = vpack.c.bf16 %v2256_v57, %v2255_v55 }
 0x8d6   : > { %v3505_v0 = vpop.eup %3504 }
 0x8d7   : > { %v1815_v26 = vsel %vm1192_vm10, %v3505_v0, 0.0 }
 0x8d8   : > { %1816 = vadd.xlane.f32.xlu1 %v1815_v26  ;;  %v2258_v26 = vld [vmem:[%s4056_s23 + $0x78] sm:$0xff] }
 0x90a   : > { %v1963_v27 = vpop.f32.mrb[14].mxu0 }
 0x90b   : > { %v1967_v29 = vsel %vm4189_vm2, %v1963_v27, 0.0  ;;  %v3130_v30 = vpop.f32.mrb[15].mxu0  ;;  %vm1620_vm2 = vcmask 588800  }
 0x90c   : > { %1972 = vrot.lane.b32.xlu0 %v1967_v29, %s3736_s8  ;;  %1969 = vrot.lane.b32.xlu1 %v1967_v29, %s3735_s0  ;;  %s4727_s0 = scalar_lea.vmem %s4641_s6, %s4049_s27 }
 0x965   : > { %v1817_v31 = vpop.xlane.xlu1 %1816 }
 0x966   : > { %3506 = vrcp.f32 %v1817_v31 }
 0x970   : > { %v3507_v4 = vpop.eup %3506 }
 0x971   : > { %v4354_v32 = vmul.f32 %v3507_v4, %v3505_v0  ;;  %v2257_v0 = vld [vmem:[%s4056_s23 + $0x70] sm:$0xff] }
 0x972   : > { %v3322_v27 = vpack.c.bf16 %v2258_v26, %v2257_v0  ;;  %v1567_v26 = vrot.slane %v4267_v24, 6 }
 0x973   : > { %3124 = vmatmul.mubr.msk.f32.vlgmr.msra.gmra.mrb[8].mxu1 %vm1192_vm10, %v4354_v32  ;;  %v2171_v12 = vrot.slane %v4354_v32, 3  ;;  %v2179_v57 = vrot.slane %v4354_v32, 5  ;;  %v2183_v0 = vrot.slane %v4354_v32, 6 }
 0x974   : > { %3132 = vmatpush3.xpose.msk.msra.mxu1 %vm1002_vm0, %v1996_v33  ;;  %3133 = vmatprep.mubr.msk.f32.mxu1 %vm3734_vm1, %v3733_v9  ;;  %vm1617_vm1 = vcmask 457728  }
 0x975   : > { %3295 = vmatprep.subr.bf16.mxu1 %v3294_v6 }
 0x977   : > { %3134 = vmatmul.mubr.msk.f32.vlgmr.msra.gmra.mrb[10].mxu1 %vm1002_vm0, %v1894_v21  ;;  %v2253_v21 = vld [vmem:[%s4056_s23 + $0x50] sm:$0xff] }
 0x978   : > { %3297 = vmatpush3.bf16.msra.mxu1 %v3294_v6  ;;  %v3314_v2 = vpack.c.bf16 %v2254_v22, %v2253_v21  ;;  %v1559_v21 = vrot.slane %v4267_v24, 4  ;;  %v2398_v22 = vld [vmem:[%s4078_s4 + $0x70] sm:$0xff] }
 0x97e   : > { %v1973_v7 = vpop.permute.xlu0 %1972  ;;  %v1970_v35 = vpop.permute.xlu1 %1969 }
 0x97f   : > { %v1975_v36 = vsel %vm1087_vm4, %v1970_v35, %v1973_v7  ;;  %vm1624_vm4 = vcmask 719872  }
 0x980   : > { %v1976_v37 = vsel %vm4203_vm5, %v1975_v36, %v1967_v29  ;;  %vm1626_vm5 = vcmask 785408  }
 0x981   : > { %1981 = vrot.lane.b32.xlu0 %v1976_v37, %s3738_s14  ;;  %1978 = vrot.lane.b32.xlu1 %v1976_v37, %s3737_s15  ;;  %s4728_s14 = sld [smem:[#allocation32_spill]] }
 0x9f3   : > { %v1982_v38 = vpop.permute.xlu0 %1981  ;;  %v1979_v39 = vpop.permute.xlu1 %1978 }
 0x9f4   : > { %v1984_v40 = vsel %vm1099_vm6, %v1979_v39, %v1982_v38  ;;  %vm1628_vm6 = vcmask 850944  }
 0x9f5   : > { %v1985_v9 = vsel %vm1103_vm7, %v1984_v40, %v1976_v37  ;;  %vm1630_vm7 = vcmask 916480  }
 0x9f6   : > { %1990 = vrot.lane.b32.xlu0 %v1985_v9, %s3739_s28  ;;  %1987 = vrot.lane.b32.xlu1 %v1985_v9, %s3740_s25  ;;  %s4729_s28 = scalar_lea.vmem %s4728_s14, %s4049_s27 }
 0xa46   : > { %v4372_v41 = vpop.f32.mrb[8].mxu1 }
 0xa47   : > { %v3125_v42 = vpop.f32.mrb[9].mxu1 }
 0xa48   : > { %v2385_v42 = vld [vmem:[%s4078_s4 + $0x8] sm:$0xff] }
 0xa4a   : > { %v2065_v18 = vpop.f32.mrb[10].mxu1 }
 0xa4b   : > { %v3135_v43 = vpop.f32.mrb[11].mxu1 }
 0xa68   : > { %v1991_v44 = vpop.permute.xlu0 %1990  ;;  %v1988_v45 = vpop.permute.xlu1 %1987 }
 0xa69   : > { %v1993_v46 = vsel %vm1112_vm8, %v1988_v45, %v1991_v44  ;;  %v2387_v44 = vld [vmem:[%s4078_s4 + $0x18] sm:$0xff]  ;;  %vm1632_vm8 = vcmask 982016  }
 0xa6a   : > { %v1994_v47 = vsel %vm1116_vm9, %v1993_v46, %v1985_v9  ;;  %v2388_v46 = vld [vmem:[%s4078_s4 + $0x20] sm:$0xff] }
 0xa6b   : > { %v2066_v48 = vadd.f32 %v2065_v18, %v1994_v47  ;;  %v2386_v18 = vld [vmem:[%s4078_s4 + $0x10] sm:$0xff]  ;;  %v2389_v47 = vld [vmem:[%s4078_s4 + $0x28] sm:$0xff] }
 0xa6c   : > { %v3330_v45 = vpack.c.bf16 %v2387_v44, %v2386_v18 }
 0xa6d   : > { %v2069_v49 = vmul.f32 0.125, %v2066_v48  ;;  %v3334_v48 = vpack.c.bf16 %v2389_v47, %v2388_v46 }
 0xa6f   : > { %v2070_v23 = vsel %vm1192_vm10, %v2069_v49, -inf }
 0xa70   : > { %2071 = vmax.xlane.f32.xlu1 %v2070_v23 }
 0xafd   : > { %v2072_v50 = vpop.xlane.xlu1 %2071 }
 0xafe   : > { %v2073_v51 = vsub.f32 %v2069_v49, %v2072_v50 }
 0xb00   : > { %v2074_v54 = vmul.f32 1.442695, %v2073_v51 }
 0xb02   : > { %3508 = vpow2.f32 %v2074_v54 }
 0xb0c   : > { %v3509_v56 = vpop.eup %3508 }
 0xb0d   : > { %v2076_v59 = vsel %vm1192_vm10, %v3509_v56, 0.0 }
 0xb0e   : > { %2077 = vadd.xlane.f32.xlu0 %v2076_v59  ;;  %v2167_v59 = vrot.slane %v4354_v32, 2 }
 0xb24   : > { %2082 = vrot.lane.b32.xlu0 %v4261_v19, %s3741_s22  ;;  %v3298_v19 = vpack.c.bf16 %v2246_v8, %v2245_v5  ;;  %v2393_v5 = vld [vmem:[%s4078_s4 + $0x48] sm:$0xff]  ;;  %v2163_v8 = vrot.slane %v4354_v32, 1 }
 0xb25   : > { %v3342_v6 = vpack.c.bf16 %v2393_v5, %v2392_v1  ;;  %v2941_v1 = vld [vmem:[%s4729_s28] ss:$0 sm:$0xff] }
 0xb26   : > { %3299 = vmatprep.subr.bf16.mxu1 %v3298_v19 }
 0xb27   : > { %3301 = vmatpush3.bf16.msra.mxu1 %v3298_v19  ;;  %v1551_v19 = vrot.slane %v4267_v24, 2 }
 0xb28   : > { %3303 = vmatprep.subr.bf16.mxu1 %v3302_v13 }
 0xb2b   : > { %3305 = vmatpush3.bf16.msra.mxu1 %v3302_v13  ;;  %v3346_v13 = vpack.c.bf16 %v2395_v11, %v2394_v10 }
 0xb2c   : > { %3307 = vmatprep.subr.bf16.mxu1 %v3306_v15 }
 0xb2f   : > { %3309 = vmatpush3.bf16.msra.mxu1 %v3306_v15  ;;  %v2396_v15 = vld [vmem:[%s4078_s4 + $0x60] sm:$0xff] }
 0xb30   : > { %3311 = vmatprep.subr.bf16.mxu1 %v3310_v20  ;;  %v3350_v17 = vpack.c.bf16 %v2397_v16, %v2396_v15  ;;  %v2491_v15 = vld [vmem:[%s4088_s2 + $0x38] sm:$0xff] }
 0xb33   : > { %3313 = vmatpush3.bf16.msra.mxu1 %v3310_v20  ;;  %v2175_v20 = vrot.slane %v4354_v32, 4 }
 0xb34   : > { %3315 = vmatprep.subr.bf16.mxu1 %v3314_v2 }
 0xb37   : > { %3317 = vmatpush3.bf16.msra.mxu1 %v3314_v2  ;;  %v2399_v2 = vld [vmem:[%s4078_s4 + $0x78] sm:$0xff] }
 0xb38   : > { %3319 = vmatprep.subr.bf16.mxu1 %v3318_v25  ;;  %v3354_v55 = vpack.c.bf16 %v2399_v2, %v2398_v22 }
 0xb3b   : > { %3321 = vmatpush3.bf16.msra.mxu1 %v3318_v25  ;;  %v1563_v25 = vrot.slane %v4267_v24, 5 }
 0xb3c   : > { %3323 = vmatprep.subr.bf16.mxu1 %v3322_v27 }
 0xb3f   : > { %3325 = vmatpush3.bf16.msra.mxu1 %v3322_v27  ;;  %v2187_v27 = vrot.slane %v4354_v32, 7 }
 0xb9b   : > { %v2078_v58 = vpop.xlane.xlu0 %2077 }
 0xb9c   : > { %3510 = vrcp.f32 %v2078_v58  ;;  %v2390_v58 = vld [vmem:[%s4078_s4 + $0x30] sm:$0xff] }
 0xb9f   : > { %v2083_v60 = vpop.permute.xlu0 %2082 }
 0xba0   : > { %3137 = vmatpush3.msra.mxu0 %v2083_v60  ;;  %v2391_v60 = vld [vmem:[%s4078_s4 + $0x38] sm:$0xff] }
 0xba6   : > { %v3511_v61 = vpop.eup %3510 }
 0xba7   : > { %v4381_v62 = vmul.f32 %v3511_v61, %v3509_v56  ;;  %v3338_v61 = vpack.c.bf16 %v2391_v60, %v2390_v58 }
 0xba9   : > { %3139 = vmatmul.mubr.msk.f32.vlgmr.msra.gmra.mrb[16].mxu0 %vm1192_vm10, %v4381_v62 }
 0xc7c   : > { %v2154_v29 = vpop.f32.mrb[16].mxu0 }
 0xc7d   : > { %v3491_v30 = vpack.i.bf16 %v2154_v29, %v4338_v53  ;;  %v3140_v31 = vpop.f32.mrb[17].mxu0  ;;  %v2939_v53 = vld [vmem:[%s4726_s11] ss:$0 sm:$0xff] }
 0xc7e   : > { %v2484_v29 = vld [vmem:[%s4088_s2] sm:$0xff]  ;;  %v2486_v31 = vld [vmem:[%s4088_s2 + $0x10] sm:$0xff] }
 0xc7f   : > { %3492 = vrot.lane.b32.xlu1 %v3491_v30, %s3741_s22  ;;  %v2485_v30 = vld [vmem:[%s4088_s2 + $0x8] sm:$0xff] }
 0xcf1   : > { %v3493_v4 = vpop.permute.xlu1 %3492 }
 0xcf2   : > { %v3495_v33 = vunpack.i.h.bf16 %v3493_v4  ;;  %v3494_v7 = vunpack.i.l.bf16 %v3493_v4  ;;  %v3358_v4 = vpack.c.bf16 %v2485_v30, %v2484_v29 }
 0xcf4   : > { %v1546_v35 = vsel %vm1002_vm0, %v4297_v34, %v3494_v7  ;;  %v2162_v36 = vsel %vm1002_vm0, %v4372_v41, %v3495_v33  ;;  %v2384_v41 = vld [vmem:[%s4078_s4] sm:$0xff]  ;;  %s3747_s4 = smov 48   ;;  %v2487_v33 = vld [vmem:[%s4088_s2 + $0x18] sm:$0xff]  ;;  %3359 = vmatprep.subr.bf16.mxu1 %v3358_v4 }
 0xcf5   : > { %3173 = vmatprep.mubr.f32.mxu1 %v1546_v35  ;;  %v3326_v43 = vpack.c.bf16 %v2385_v42, %v2384_v41  ;;  %v3362_v7 = vpack.c.bf16 %v2487_v33, %v2486_v31  ;;  %v2488_v35 = vld [vmem:[%s4088_s2 + $0x20] sm:$0xff]  ;;  %v1578_v33 = vrot.slane %v4315_v3, 1 }
 0xcf6   : > { %3174 = vmatmul.mubr.f32.vlgmr.msra.gmra.mrb[12].mxu1 %v2162_v36  ;;  %v2489_v36 = vld [vmem:[%s4088_s2 + $0x28] sm:$0xff] }
 0xcf7   : > { %3327 = vmatprep.subr.bf16.mxu0 %v3326_v43  ;;  %3361 = vmatpush3.bf16.msra.mxu1 %v3358_v4  ;;  %v1571_v4 = vrot.slane %v4267_v24, 7 }
 0xcf8   : > { %3329 = vmatpush3.bf16.msra.mxu0 %v3326_v43  ;;  %3363 = vmatprep.subr.bf16.mxu1 %v3362_v7 }
 0xcf9   : > { %3331 = vmatprep.subr.bf16.mxu0 %v3330_v45 }
 0xcfb   : > { %3365 = vmatpush3.bf16.msra.mxu1 %v3362_v7  ;;  %v2194_v7 = vrot.slane %v4381_v62, 1 }
 0xcfc   : > { %3333 = vmatpush3.bf16.msra.mxu0 %v3330_v45 }
 0xcfd   : > { %3335 = vmatprep.subr.bf16.mxu0 %v3334_v48 }
 0xd00   : > { %3337 = vmatpush3.bf16.msra.mxu0 %v3334_v48 }
 0xd01   : > { %3339 = vmatprep.subr.bf16.mxu0 %v3338_v61 }
 0xd04   : > { %3341 = vmatpush3.bf16.msra.mxu0 %v3338_v61 }
 0xd05   : > { %3343 = vmatprep.subr.bf16.mxu0 %v3342_v6 }
 0xd08   : > { %3345 = vmatpush3.bf16.msra.mxu0 %v3342_v6 }
 0xd09   : > { %3347 = vmatprep.subr.bf16.mxu0 %v3346_v13 }
 0xd0c   : > { %3349 = vmatpush3.bf16.msra.mxu0 %v3346_v13 }
 0xd0d   : > { %3351 = vmatprep.subr.bf16.mxu0 %v3350_v17 }
 0xd10   : > { %3353 = vmatpush3.bf16.msra.mxu0 %v3350_v17  ;;  %v2942_v17 = vld [vmem:[%s749_s29] ss:$0 sm:$0xff]  ;;  %s3749_s29 = smov 72  }
 0xd11   : > { %3355 = vmatprep.subr.bf16.mxu0 %v3354_v55 }
 0xd14   : > { %3357 = vmatpush3.bf16.msra.mxu0 %v3354_v55 }
 0xdc9   : > { %v3175_v37 = vpop.f32.mrb[12].mxu1 }
 0xdca   : > { %v2338_v38 = vadd.f32 %v3175_v37, %v2939_v53  ;;  %v2332_v39 = vpop.f32.mrb[13].mxu1 }
 0xdcb   : > { %v2333_v40 = vadd.f32 %v2939_v53, %v2332_v39  ;;  %v3366_v53 = vpack.c.bf16 %v2489_v36, %v2488_v35  ;;  %v1582_v35 = vrot.slane %v4315_v3, 2  ;;  %v1586_v36 = vrot.slane %v4315_v3, 3 }
 0xdcc   : > { %v2342_v9 = vadd.f32 %v2338_v38, %v4146_v52 }
 0xdcd   : > { %v2341_v34 = vadd.f32 %v2333_v40, %v4126_v28  ;;  %3367 = vmatprep.subr.bf16.mxu1 %v3366_v53 }
 0xdce   : > { %2347 = vadd.xlane.f32.xlu0 %v2342_v9  ;;  %3369 = vmatpush3.bf16.msra.mxu1 %v3366_v53  ;;  %v2202_v53 = vrot.slane %v4381_v62, 3 }
 0xdcf   : > { %2345 = vadd.xlane.f32.xlu1 %v2341_v34 }
 0xe5b   : > { %v2348_v28 = vpop.xlane.xlu0 %2347 }
 0xe5c   : > { %v2351_v52 = vmul.f32 0.0078125, %v2348_v28  ;;  %v2346_v49 = vpop.xlane.xlu1 %2345 }
 0xe5d   : > { %v2350_v23 = vmul.f32 0.0078125, %v2346_v49 }
 0xe5e   : > { %v4420_v50 = vsub.f32 %v2342_v9, %v2351_v52 }
 0xe5f   : > { %v4422_v51 = vsub.f32 %v2341_v34, %v2350_v23 }
 0xe60   : > { %v2355_v54 = vmul.f32 %v4420_v50, %v4420_v50 }
 0xe61   : > { %v2354_v56 = vmul.f32 %v4422_v51, %v4422_v51 }
 0xe62   : > { %2358 = vadd.xlane.f32.xlu1 %v2355_v54 }
 0xe63   : > { %2356 = vadd.xlane.f32.xlu0 %v2354_v56 }
 0xe73   : > { %2168 = vrot.lane.b32.xlu1 %v2167_v59, %s3742_s17 }
 0xe77   : > { %1548 = vrot.lane.b32.xlu1 %v1547_v63, %s3743_s20 }
 0xe79   : > { %2164 = vrot.lane.b32.xlu0 %v2163_v8, %s3743_s20 }
 0xe7b   : > { %1552 = vrot.lane.b32.xlu1 %v1551_v19, %s3742_s17  ;;  %s3751_s17 = smov 88  }
 0xe7d   : > { %2172 = vrot.lane.b32.xlu0 %v2171_v12, %s3744_s13 }
 0xe7f   : > { %1556 = vrot.lane.b32.xlu1 %v1555_v14, %s3744_s13  ;;  %v2490_v14 = vld [vmem:[%s4088_s2 + $0x30] sm:$0xff]  ;;  %s3753_s13 = smov 104  }
 0xe80   : > { %v3370_v16 = vpack.c.bf16 %v2491_v15, %v2490_v14 }
 0xe81   : > { %2176 = vrot.lane.b32.xlu0 %v2175_v20, %s3745_s24 }
 0xe82   : > { %3371 = vmatprep.subr.bf16.mxu1 %v3370_v16 }
 0xe83   : > { %1560 = vrot.lane.b32.xlu1 %v1559_v21, %s3745_s24  ;;  %3373 = vmatpush3.bf16.msra.mxu1 %v3370_v16  ;;  %s3754_s24 = smov 112  }
 0xe85   : > { %2180 = vrot.lane.b32.xlu0 %v2179_v57, %s3746_s19 }
 0xe87   : > { %1564 = vrot.lane.b32.xlu1 %v1563_v25, %s3746_s19  ;;  %v2943_v25 = vld [vmem:[%s757_s3] ss:$0 sm:$0xff]  ;;  %s3750_s3 = smov 80   ;;  %s3755_s19 = smov 120  }
 0xe89   : > { %2184 = vrot.lane.b32.xlu0 %v2183_v0, %s3747_s4 }
 0xe8b   : > { %1568 = vrot.lane.b32.xlu1 %v1567_v26, %s3747_s4 }
 0xe8d   : > { %2188 = vrot.lane.b32.xlu0 %v2187_v27, %s3748_s16 }
 0xeef   : > { %v2359_v37 = vpop.xlane.xlu1 %2358 }
 0xef0   : > { %v2361_v38 = vmul.f32 0.0078125, %v2359_v37  ;;  %v2357_v39 = vpop.xlane.xlu0 %2356  ;;  %v1590_v37 = vrot.slane %v4315_v3, 4 }
 0xef1   : > { %v2360_v40 = vmul.f32 0.0078125, %v2357_v39  ;;  %v1594_v39 = vrot.slane %v4315_v3, 5 }
 0xef2   : > { %v2363_v9 = vadd.f32 1e-06, %v2361_v38  ;;  %v2206_v38 = vrot.slane %v4381_v62, 4 }
 0xef3   : > { %v2362_v34 = vadd.f32 1e-06, %v2360_v40  ;;  %v2169_v41 = vpop.permute.xlu1 %2168  ;;  %v2210_v40 = vrot.slane %v4381_v62, 5 }
 0xef4   : > { %3512 = vrsqrt.f32 %v2363_v9  ;;  %v2165_v42 = vpop.permute.xlu0 %2164  ;;  %v2214_v9 = vrot.slane %v4381_v62, 6 }
 0xef5   : > { %3514 = vrsqrt.f32 %v2362_v34  ;;  %v2222_v18 = vsel %vm1192_vm10, %v4354_v32, %v2165_v42  ;;  %v2940_v32 = vld [vmem:[%s4727_s0] ss:$0 sm:$0xff] }
 0xef6   : > { %v2223_v43 = vsel %vm1607_vm11, %v2222_v18, %v2169_v41 }
 0xef7   : > { %v1549_v44 = vpop.permute.xlu1 %1548 }
 0xef8   : > { %v2173_v45 = vpop.permute.xlu0 %2172  ;;  %v1606_v47 = vsel %vm1192_vm10, %v4267_v24, %v1549_v44  ;;  %v2198_v24 = vrot.slane %v4381_v62, 2 }
 0xef9   : > { %v2224_v46 = vsel %vm1609_vm12, %v2223_v43, %v2173_v45 }
 0xefb   : > { %v1553_v48 = vpop.permute.xlu1 %1552 }
 0xefc   : > { %v1608_v28 = vsel %vm1607_vm11, %v1606_v47, %v1553_v48  ;;  %v2177_v52 = vpop.permute.xlu0 %2176 }
 0xefd   : > { %v2225_v49 = vsel %vm1611_vm13, %v2224_v46, %v2177_v52  ;;  %v2218_v52 = vrot.slane %v4381_v62, 7 }
 0xefe   : > { %v3513_v23 = vpop.eup %3512 }
 0xeff   : > { %v3515_v54 = vpop.eup %3514  ;;  %v1557_v56 = vpop.permute.xlu1 %1556  ;;  %v2367_v59 = vmul.f32 %v3513_v23, %v4420_v50 }
 0xf00   : > { %v1610_v58 = vsel %vm1609_vm12, %v1608_v28, %v1557_v56  ;;  %v2181_v60 = vpop.permute.xlu0 %2180  ;;  %v2366_v61 = vmul.f32 %v3515_v54, %v4422_v51  ;;  %v1598_v28 = vrot.slane %v4315_v3, 6 }
 0xf01   : > { %v2226_v63 = vsel %vm1613_vm14, %v2225_v49, %v2181_v60  ;;  %v2375_v5 = vmul.f32 %v2940_v32, %v2367_v59  ;;  %v1602_v49 = vrot.slane %v4315_v3, 7 }
 0xf02   : > { %v2374_v6 = vmul.f32 %v2940_v32, %v2366_v61 }
 0xf03   : > { %v1561_v8 = vpop.permute.xlu1 %1560  ;;  %v2383_v11 = vadd.f32 %v2941_v1, %v2375_v5 }
 0xf04   : > { %v1612_v50 = vsel %vm1611_vm13, %v1610_v58, %v1561_v8  ;;  %v2185_v19 = vpop.permute.xlu0 %2184  ;;  %v2382_v10 = vadd.f32 %v2941_v1, %v2374_v6 }
 0xf05   : > { %v4482_v51 = vsel %vm1615_vm15, %v2226_v63, %v2185_v19 }
 0xf06   : > { %3208 = vmatprep.mubr.f32.mxu0 %v2382_v10 }
 0xf07   : > { %3209 = vmatmul.mubr.f32.vlgmr.msra.gmra.mrb[18].mxu0 %v2383_v11  ;;  %v1565_v13 = vpop.permute.xlu1 %1564 }
 0xf08   : > { %v4485_v12 = vsel %vm1613_vm14, %v1612_v50, %v1565_v13  ;;  %v2189_v41 = vpop.permute.xlu0 %2188 }
 0xf0b   : > { %v1569_v34 = vpop.permute.xlu1 %1568 }
 0xfda   : > { %v3210_v20 = vpop.f32.mrb[18].mxu0 }
 0xfdb   : > { %v2479_v21 = vadd.f32 %v3210_v20, %v2942_v17  ;;  %v2473_v22 = vpop.f32.mrb[19].mxu0 }
 0xfdc   : > { %v2474_v2 = vadd.f32 %v2942_v17, %v2473_v22 }
 0xfdd   : > { %v2483_v57 = vmax.f32 %v2479_v21, 0.0 }
 0xfde   : > { %v2482_v55 = vmax.f32 %v2474_v2, 0.0 }
 0xfe0   : > { %3227 = vmatprep.mubr.msk.f32.mxu1 %vm1002_vm0, %v2482_v55 }
 0xfe1   : > { %3228 = vmatmul.mubr.msk.f32.vlgmr.msra.gmra.mrb[14].mxu1 %vm1002_vm0, %v2483_v57 }
0x10b4   : > { %v3229_v0 = vpop.f32.mrb[14].mxu1 }
0x10b5   : > { %v2577_v26 = vadd.f32 %v3229_v0, %v2943_v25  ;;  %v2571_v27 = vpop.f32.mrb[15].mxu1 }
0x10b6   : > { %v2572_v29 = vadd.f32 %v2943_v25, %v2571_v27 }
0x10b7   : > { %v2581_v30 = vadd.f32 %v2577_v26, %v2383_v11  ;;  %v1616_v11 = vsel %vm1615_vm15, %v4485_v12, %v1569_v34 }
0x10b8   : > { %v2580_v31 = vadd.f32 %v2572_v29, %v2382_v10 }
0x10b9   : > { %2586 = vadd.xlane.f32.xlu1 %v2581_v30 }
0x10ba   : > { %2584 = vadd.xlane.f32.xlu0 %v2580_v31 }
0x10ca   : > { %1572 = vrot.lane.b32.xlu1 %v1571_v4, %s3748_s16 }
0x10ce   : > { %1575 = vrot.lane.b32.xlu1 %v4315_v3, %s3741_s22  ;;  %v2228_v3 = vsel %vm1617_vm1, %v4482_v51, %v2189_v41 }
0x10d0   : > { %2191 = vrot.lane.b32.xlu0 %v4381_v62, %s3741_s22  ;;  %s3752_s22 = smov 96  }
0x10d2   : > { %1579 = vrot.lane.b32.xlu1 %v1578_v33, %s3749_s29 }
0x10d4   : > { %2195 = vrot.lane.b32.xlu0 %v2194_v7, %s3749_s29 }
0x10d6   : > { %1583 = vrot.lane.b32.xlu1 %v1582_v35, %s3750_s3 }
0x10d8   : > { %2199 = vrot.lane.b32.xlu0 %v2198_v24, %s3750_s3 }
0x10da   : > { %1587 = vrot.lane.b32.xlu1 %v1586_v36, %s3751_s17 }
0x10dc   : > { %2203 = vrot.lane.b32.xlu0 %v2202_v53, %s3751_s17  ;;  %v2946_v53 = vld [vmem:[%s760_s12] ss:$0 sm:$0xff] }
0x10de   : > { %1591 = vrot.lane.b32.xlu1 %v1590_v37, %s3752_s22 }
0x10e0   : > { %2207 = vrot.lane.b32.xlu0 %v2206_v38, %s3752_s22 }
0x10e2   : > { %1595 = vrot.lane.b32.xlu1 %v1594_v39, %s3753_s13  ;;  %v2947_v39 = vld [vmem:[%s763_s7] ss:$0 sm:$0xff] }
0x10e4   : > { %2211 = vrot.lane.b32.xlu0 %v2210_v40, %s3753_s13 }
0x10e8   : > { %2215 = vrot.lane.b32.xlu0 %v2214_v9, %s3754_s24 }
0x1146   : > { %v2587_v42 = vpop.xlane.xlu1 %2586 }
0x1147   : > { %v2589_v18 = vmul.f32 0.0078125, %v2587_v42  ;;  %v2585_v43 = vpop.xlane.xlu0 %2584 }
0x1148   : > { %v2588_v44 = vmul.f32 0.0078125, %v2585_v43 }
0x1149   : > { %v4518_v45 = vsub.f32 %v2581_v30, %v2589_v18 }
0x114a   : > { %v4520_v46 = vsub.f32 %v2580_v31, %v2588_v44  ;;  %v1573_v23 = vpop.permute.xlu1 %1572 }
0x114b   : > { %v2593_v47 = vmul.f32 %v4518_v45, %v4518_v45  ;;  %v2192_v32 = vpop.permute.xlu0 %2191  ;;  %v1618_v16 = vsel %vm1617_vm1, %v1616_v11, %v1573_v23 }
0x114c   : > { %v2592_v48 = vmul.f32 %v4520_v46, %v4520_v46  ;;  %v2229_v50 = vsel %vm1002_vm0, %v2228_v3, %v2192_v32 }
0x114d   : > { %2596 = vadd.xlane.f32.xlu1 %v2593_v47 }
0x114e   : > { %2594 = vadd.xlane.f32.xlu0 %v2592_v48  ;;  %v1576_v54 = vpop.permute.xlu1 %1575 }
0x114f   : > { %v2196_v56 = vpop.permute.xlu0 %2195  ;;  %v1619_v20 = vsel %vm1002_vm0, %v1618_v16, %v1576_v54  ;;  %vm2240_vm0 = vcmask 1040384  }
0x1150   : > { %v2230_v19 = vsel %vm1620_vm2, %v2229_v50, %v2196_v56 }
0x1152   : > { %v1580_v59 = vpop.permute.xlu1 %1579 }
0x1153   : > { %v2200_v58 = vpop.permute.xlu0 %2199  ;;  %v1621_v2 = vsel %vm1620_vm2, %v1619_v20, %v1580_v59 }
0x1154   : > { %v2231_v13 = vsel %vm1622_vm3, %v2230_v19, %v2200_v58 }
0x1156   : > { %v1584_v60 = vpop.permute.xlu1 %1583 }
0x1157   : > { %v2204_v61 = vpop.permute.xlu0 %2203  ;;  %v1623_v57 = vsel %vm1622_vm3, %v1621_v2, %v1584_v60 }
0x1158   : > { %v2232_v51 = vsel %vm1624_vm4, %v2231_v13, %v2204_v61 }
0x115a   : > { %v1588_v63 = vpop.permute.xlu1 %1587 }
0x115b   : > { %v2208_v1 = vpop.permute.xlu0 %2207  ;;  %v1625_v26 = vsel %vm1624_vm4, %v1623_v57, %v1588_v63 }
0x115c   : > { %v2233_v21 = vsel %vm1626_vm5, %v2232_v51, %v2208_v1 }
0x115e   : > { %1599 = vrot.lane.b32.xlu1 %v1598_v28, %s3754_s24  ;;  %v1592_v5 = vpop.permute.xlu1 %1591 }
0x115f   : > { %v2212_v6 = vpop.permute.xlu0 %2211  ;;  %v1627_v30 = vsel %vm1626_vm5, %v1625_v26, %v1592_v5 }
0x1160   : > { %v2234_v12 = vsel %vm1628_vm6, %v2233_v21, %v2212_v6 }
0x1162   : > { %v1596_v8 = vpop.permute.xlu1 %1595 }
0x1163   : > { %v2216_v62 = vpop.permute.xlu0 %2215  ;;  %v1629_v31 = vsel %vm1628_vm6, %v1627_v30, %v1596_v8 }
0x1164   : > { %2219 = vrot.lane.b32.xlu0 %v2218_v52, %s3755_s19  ;;  %v2235_v25 = vsel %vm1630_vm7, %v2234_v12, %v2216_v62 }
0x1168   : > { %1603 = vrot.lane.b32.xlu0 %v1602_v49, %s3755_s19 }
0x11da   : > { %v2597_v10 = vpop.xlane.xlu1 %2596 }
0x11db   : > { %v2599_v14 = vmul.f32 0.0078125, %v2597_v10  ;;  %v2595_v15 = vpop.xlane.xlu0 %2594 }
0x11dc   : > { %v2598_v17 = vmul.f32 0.0078125, %v2595_v15 }
0x11dd   : > { %v2601_v22 = vadd.f32 1e-06, %v2599_v14 }
0x11de   : > { %v2600_v55 = vadd.f32 1e-06, %v2598_v17  ;;  %v1600_v27 = vpop.permute.xlu1 %1599 }
0x11df   : > { %3516 = vrsqrt.f32 %v2601_v22  ;;  %v2220_v0 = vpop.permute.xlu0 %2219  ;;  %v1631_v4 = vsel %vm1630_vm7, %v1629_v31, %v1600_v27 }
0x11e0   : > { %3518 = vrsqrt.f32 %v2600_v55  ;;  %v2236_v29 = vsel %vm1632_vm8, %v2235_v25, %v2220_v0 }
0x11e1   : > { %v2238_v33 = vrot.slane %v2236_v29, 7 }
0x11e3   : > { %v1604_v7 = vpop.permute.xlu0 %1603 }
0x11e4   : > { %v1633_v35 = vsel %vm1632_vm8, %v1631_v4, %v1604_v7 }
0x11e5   : > { %v2241_v24 = vsel %vm2240_vm0, %v1633_v35, %v2238_v33 }
0x11e6   : > { %2242 = vst [vmem:[%s4104_s26] sm:$0x3] %v2241_v24 }
0x11e9   : > { %v3517_v36 = vpop.eup %3516 }
0x11ea   : > { %v3519_v37 = vpop.eup %3518  ;;  %v2605_v38 = vmul.f32 %v3517_v36, %v4518_v45 }
0x11eb   : > { %v2604_v40 = vmul.f32 %v3519_v37, %v4520_v46  ;;  %2627 = sbr.rel (%p2948_p1) target bundleno = 4594 (0x11f2), region = 96 }
0x11ec   : > { %v2613_v9 = vmul.f32 %v2946_v53, %v2605_v38 }
0x11ed   : > { %v2612_v34 = vmul.f32 %v2946_v53, %v2604_v40 }
0x11ee   : > { %v2621_v41 = vadd.f32 %v2947_v39, %v2613_v9 }
0x11ef   : > { %v2620_v42 = vadd.f32 %v2947_v39, %v2612_v34 }
0x11f0   : > { %2623 = vst [vmem:[#allocation2 + $0x8] sm:$0xff] %v2621_v41  ;;  %2629 = vst [vmem:[#allocation9 + $0x8] sm:$0xff] (!%p2948_p1), %v2621_v41 }
0x11f1   : > { %2622 = vst [vmem:[#allocation2] sm:$0xff] %v2620_v42  ;;  %2628 = vst [vmem:[#allocation9] sm:$0xff] (!%p2948_p1), %v2620_v42 }
0x11f2 PF: > { %s3756_s12 = smov [#allocation9]   ;;  %s4733_s15 = sld [smem:[#allocation23_spill]] }
0x11f3   : > { %s2644_s14 = sshll.u32 %s3756_s12, 4  ;;  %s2645_s14 = int_to_ptr.vmem [resolvable:$true] %s2644_s14 }
0x11f4   : > { %s3608_s27 = scalar_lea.vmem %s2645_s14, 256  ;;  %p3615_p6 = scmp.lt.s32.totalorder %s2645_s14, %s2645_s14 }
0x11f5   : > { %p3609_p12 = scmp.ne.s32.totalorder %s2645_s14, %s3608_s27  ;;  %p3616_p8 = scmp.lt.s32.totalorder %s3608_s27, %s3608_s27 }
0x11f7   : > { %p3617_p10 = por %p3616_p8, %p3615_p6 }
0x11f8   : > { %p4734_p0 = scmp.eq.s32.totalorder %s4733_s15, 1 }
0x11fa   : > { %p3610_p9 = pnand %p3609_p12, %p4734_p0 }
0x11fc   : > { %p3611_p2 = pneg %p3610_p9 }
0x11fe   : > { %p3618_p7 = pnand %p3617_p10, %p3611_p2 }
0x1200   : > { %3621 = shalt.err (!%p3618_p7)
}
0x1201   : > { %s4735_s25 = sld [smem:[#allocation37_spill]]  ;;  %p4736_p3 = pmov %p4734_p0 }
0x1207   : > { %s3622_s30 = scalar_lea.hbm %s4735_s25, 256 }
0x1208   : > { %p3623_p13 = scmp.ne.s32.totalorder %s4735_s25, %s3622_s30  ;;  %p3628_p5 = scmp.lt.u32.totalorder %s3622_s30, %s4735_s25 }
0x120a   : > { %p3624_p11 = pnand %p3623_p13, %p4736_p3 }
0x120c   : > { %p3625_p4 = pneg %p3624_p11 }
0x120e   : > { %p3630_p1 = pnand %p3628_p5, %p3625_p4 }
0x1210   : > { %3633 = shalt.err (!%p3630_p1)
}
0x1211   : > { %s3757_s3 = smov 128   ;;  %p4737_p12 = pmov %p4734_p0 }
0x1212   : > { %s4738_s13 = sld [smem:[#allocation26_spill]]  ;;  %s4739_s24 = sld [smem:[#allocation24_spill]] }
0x1213   : > { %3387 = dma.vmem_to_hbm [thread:$0]  (%p4737_p12), %s2645_s14, 256, %s4735_s25, [#allocation5], %s3757_s3, %s3757_s3, %s3743_s20  }
0x1214   : > { %s2951_s19 = sshll.u32 %s3716_s21, 5  ;;  %s2661_s4 = sshll.u32 %s4104_s26, 4  ;;  %s2662_s4 = int_to_ptr.vmem [resolvable:$true] %s2661_s4 }
0x1215   : > { %s4740_s18 = sld [smem:[#allocation38_spill]]  ;;  %s3634_s27 = scalar_lea.vmem %s2662_s4, 32 }
0x1216   : > { %p3635_p0 = scmp.ne.s32.totalorder %s2662_s4, %s3634_s27  ;;  %s3758_s7 = smov [#allocation10]  }
0x1217   : > { %s3638_s28 = sshll.u32 %s3758_s7, 4  ;;  %s3639_s28 = int_to_ptr.vmem [resolvable:$false] %s3638_s28 }
0x1218   : > { %s2631_s12 = scalar_lea.sflag [#allocation11], %s4738_s13  ;;  %p4742_p9 = scmp.ne.s32.totalorder %s4739_s24, 0 }
0x1219   : > { %s3640_s30 = scalar_lea.vmem %s3639_s28, 64  ;;  %p3641_p8 = scmp.lt.s32.totalorder %s2662_s4, %s3639_s28 }
0x121a   : > { %p3636_p2 = pnand %p3635_p0, %p4742_p9  ;;  %p3642_p10 = scmp.lt.s32.totalorder %s3640_s30, %s3634_s27 }
0x121b   : > { %s4741_s0 = smov %s4740_s18  ;;  %s4588_s8 = scalar_lea.hbm %s4740_s18, %s2951_s19 }
0x121c   : > { %p3637_p6 = pneg %p3636_p2  ;;  %p3643_p7 = por %p3642_p10, %p3641_p8 }
0x121e   : > { %p3644_p13 = pnand %p3643_p7, %p3637_p6 }
0x1220   : > { %3647 = shalt.err (!%p3644_p13)
}
0x1221   : > { %s3648_s21 = scalar_lea.hbm %s4588_s8, 32  ;;  %s3652_s14 = scalar_lea.hbm %s4741_s0, 64 }
0x1222   : > { %p3649_p3 = scmp.ne.s32.totalorder %s4588_s8, %s3648_s21  ;;  %p3653_p5 = scmp.lt.u32.totalorder %s4588_s8, %s4741_s0 }
0x1223   : > { %p3654_p1 = scmp.lt.u32.totalorder %s3652_s14, %s3648_s21  ;;  %p3656_p0 = scmp.lt.u32.totalorder %s3648_s21, %s4588_s8 }
0x1224   : > { %p3650_p11 = pnand %p3649_p3, %p4742_p9 }
0x1225   : > { %p3655_p12 = por %p3654_p1, %p3653_p5 }
0x1226   : > { %p3651_p4 = pneg %p3650_p11 }
0x1227   : > { %p3657_p2 = por %p3656_p0, %p3655_p12 }
0x1229   : > { %p3658_p6 = pnand %p3657_p2, %p3651_p4 }
0x122b   : > { %3661 = shalt.err (!%p3658_p6)
}
0x122c   : > { %3388 = dma.vmem_to_hbm [thread:$0]  (%p4742_p9), %s2662_s4, 32, %s4588_s8, %s2631_s12  }
0x122d   : > { %p4743_p8 = scmp.eq.s32.totalorder %s4733_s15, 1 }
0x122f   : > { %3695 = dma.done.wait (%p4743_p8), [#allocation5], 256   ;;  %p4744_p10 = pmov %p4743_p8 }
0x1231   : > { %3697 = vsyncadd (%p4744_p10), [#allocation5], 4294967040 }
0x1232 PF: > { %s4745_s11 = sld [smem:[#allocation16_spill]]  ;;  %s4746_s29 = sld [smem:[#allocation25_spill]] }
0x1233   : > { %s4747_s3 = sld [smem:[#allocation20_spill]] }
0x1238   : > { %s2677_s17 = sand.u32 1, %s4745_s11   ;;  %p4748_p7 = scmp.ne.s32.totalorder %s4746_s29, 0 }
0x1239   : > { %p4749_p13 = scmp.ge.s32.totalorder %s4747_s3, 2  ;;  %s2678_s22 = scalar_lea.sflag [#allocation11], %s2677_s17 }
0x123b   : > { %p3404_p3 = pnand %p4749_p13, %p4748_p7 }
0x123d   : > { %3699 = dma.done.wait (!%p3404_p3), %s2678_s22, 32  }
0x123e   : > { %3701 = vsyncadd (!%p3404_p3), %s2678_s22, 4294967264  ;;  %s34_s23 = sadd.s32 1, %s4747_s3   ;;  %s4750_s18 = sld [smem:[#allocation17_spill]] }
0x123f   : > { %p31_p11 = scmp.ge.s32.totalorder %s34_s23, 4   ;;  %s4751_s19 = sld [smem:[#allocation18_spill]] }
0x1240   : > { %s4752_s20 = sld [smem:[#allocation22_spill]]  ;;  %s4753_s21 = sld [smem:[#allocation19_spill]] }
0x1241   : > { %s4754_s22 = sld [smem:[#allocation21_spill]]  ;;  %33 = sbr.rel (!%p31_p11) target bundleno = 21 (0x15), region = 189 }
0x1248   :  { %2683 = vsyncpa [#allocation4], 1 }
0x1249   :  { %2685 = vsyncpa [#allocation4 + $0x1], 1 }
0x124a   :  { %2686 = vsyncpa [#allocation7], 1 }
0x124b   :  { %2688 = vsyncpa [#allocation7 + $0x1], 1 }
0x124c   :  { %2689 = vsyncpa [#allocation5], 1 }
0x124d   :  { %2691 = vsyncpa [#allocation5 + $0x1], 1 }
0x124e   :  { %2692 = vsyncpa [#allocation11], 1 }
0x124f   :  { %2694 = vsyncpa [#allocation11 + $0x1], 1 }

</bundles_post_ra>
